<compile_context>
chip_gen: v5e
topology: v5e:2x2
jax: 0.10.0
libtpu: 0.0.40
codegen_flags: <defaults>
</compile_context>

<pallas_src>
from functools import partial
import math

import numpy as np
import jax
import jax.numpy as jnp
from jax import lax
from jax.experimental import pallas as pl
from jax.experimental.pallas import tpu as pltpu


# ---------------------------------------------------------------------------
# Pallas kernel: attention for a tile of WT windows (each of N = wh*ww tokens)
# ---------------------------------------------------------------------------
def _window_attn_kernel(x_ref, wqkv_ref, bqkv_ref, rpb_ref, wproj_ref, bproj_ref,
                        *rest, num_heads, windows_per_tile, tokens_per_window,
                        matmul_dtype, has_mask):
    if has_mask:
        mask_ref, o_ref = rest
    else:
        (o_ref,) = rest

    WT, N = windows_per_tile, tokens_per_window
    C = x_ref.shape[-1]
    hd = C // num_heads

    x = x_ref[...]                                              # (WT*N, C), matmul_dtype

    # qkv = x @ Wqkv^T + b  (1/sqrt(hd) already folded into the Q rows of Wqkv/bqkv)
    qkv = lax.dot_general(x, wqkv_ref[...], (((1,), (1,)), ((), ())),
                          preferred_element_type=jnp.float32)
    qkv = qkv + bqkv_ref[...]                                   # f32 bias add, (WT*N, 3C)
    qkv = qkv.reshape(WT, N, 3 * C)

    if has_mask:
        mask = mask_ref[...]                                    # (WT, N, N) f32

    out = jnp.zeros((WT * N, C), jnp.float32)                   # f32 accumulator
    # TODO(synk): for large num_heads (Swin-B/L late stages) switch this static
    # unroll to a batched dot_general / fori_loop to bound vreg live ranges.
    for h in range(num_heads):
        qh = qkv[:, :, h * hd:(h + 1) * hd].astype(matmul_dtype)
        kh = qkv[:, :, C + h * hd:C + (h + 1) * hd].astype(matmul_dtype)
        vh = qkv[:, :, 2 * C + h * hd:2 * C + (h + 1) * hd].astype(matmul_dtype)

        # batched over the WT windows; contraction on last dims (no .T copy)
        attn = jnp.einsum('wqd,wkd->wqk', qh, kh,
                          preferred_element_type=jnp.float32)    # (WT, N, N)
        attn = attn + rpb_ref[h]                                 # rel-pos bias (f32)
        if has_mask:
            attn = attn + mask                                   # shift mask (f32)
        attn = attn - jnp.max(attn, axis=-1, keepdims=True)
        p = jnp.exp(attn)
        p = p * pl.reciprocal(jnp.sum(p, axis=-1, keepdims=True), approx=True)
        # TODO(synk): attention_dropout / dropout are 0.0 in this config (inference no-op)

        oh = jnp.einsum('wqk,wkd->wqd', p.astype(matmul_dtype), vh,
                        preferred_element_type=jnp.float32)      # (WT, N, hd)
        # fused output projection: out += oh @ Wproj[:, h*hd:(h+1)*hd]^T
        out = out + lax.dot_general(
            oh.reshape(WT * N, hd).astype(matmul_dtype),
            wproj_ref[:, h * hd:(h + 1) * hd],
            (((1,), (1,)), ((), ())),
            preferred_element_type=jnp.float32)

    out = out + bproj_ref[...]                                   # f32 bias add
    o_ref[...] = out.astype(o_ref.dtype)                         # single C-wide store


# ---------------------------------------------------------------------------
# Static helpers: relative position bias + shift attention mask
# ---------------------------------------------------------------------------
def _relative_position_index(window_size):
    wh, ww = window_size
    coords = np.stack(np.meshgrid(np.arange(wh), np.arange(ww), indexing="ij"))
    coords_flat = coords.reshape(2, -1)                               # (2, N)
    rel = coords_flat[:, :, None] - coords_flat[:, None, :]           # (2, N, N)
    rel = rel.transpose(1, 2, 0)                                      # (N, N, 2)
    rel[:, :, 0] += wh - 1
    rel[:, :, 1] += ww - 1
    rel[:, :, 0] *= 2 * ww - 1
    return rel.sum(-1).reshape(-1)                                    # (N*N,)


def _relative_position_bias(table, window_size, num_heads):
    wh, ww = window_size
    N = wh * ww
    idx = _relative_position_index(window_size)
    rpb = table[idx].reshape(N, N, num_heads)
    return jnp.transpose(rpb, (2, 0, 1))                              # (nh, N, N)


def _shift_attn_mask(pad_H, pad_W, window_size, shift_size):
    wh, ww = window_size
    sh, sw = shift_size
    nWh, nWw = pad_H // wh, pad_W // ww
    num_windows = nWh * nWw
    N = wh * ww
    m = np.zeros((pad_H, pad_W), np.float32)
    h_slices = ((0, -wh), (-wh, -sh), (-sh, None))
    w_slices = ((0, -ww), (-ww, -sw), (-sw, None))
    cnt = 0
    for hs in h_slices:
        for ws in w_slices:
            m[hs[0]:hs[1], ws[0]:ws[1]] = cnt
            cnt += 1
    m = m.reshape(nWh, wh, nWw, ww).transpose(0, 2, 1, 3).reshape(num_windows, N)
    diff = m[:, None, :] - m[:, :, None]                              # (nW, N, N)
    return np.where(diff != 0, -100.0, 0.0).astype(np.float32)


# ---------------------------------------------------------------------------
# Tiling / VMEM sizing helpers (per-generation, review items 4/5/6/10)
# ---------------------------------------------------------------------------
def _vmem_capacity_bytes():
    try:
        info = pltpu.get_tpu_info()
        cap = getattr(info, "vmem_capacity_bytes", None)
        if cap:
            return int(cap)
    except Exception:
        pass
    return 64 * 1024 * 1024     # conservative default (v7x per-TC)


def _per_row_and_fixed_bytes(N, C, num_heads, has_mask, mm_bytes, out_bytes):
    per_row = (2 * C * mm_bytes              # double-buffered x tile
               + 2 * C * out_bytes           # double-buffered output tile
               + 12 * C                      # qkv f32 temporary (3C * 4B)
               + 2 * 4 * N                   # attn + p f32 temporaries
               + 4 * C                       # f32 output accumulator
               + (2 * 4 * N if has_mask else 0))   # double-buffered mask tile
    fixed = 2 * (4 * C * C * mm_bytes        # qkv_w + proj_w (VMEM-resident)
                 + 4 * C * 4                 # biases (f32)
                 + num_heads * N * N * 4)    # rel-pos bias (f32)
    return per_row, fixed


def _choose_windows_per_tile(nW, N, per_row, fixed, budget):
    max_rows = max(N, (budget - fixed) // max(per_row, 1))
    target_rows = int(min(2048, max_rows))           # review: 1024-2048 row tiles
    target_wt = max(1, target_rows // N)
    if nW <= target_wt:
        return nW, nW                                # single tile == full row extent
    for d in range(target_wt, 0, -1):                # largest exact divisor of nW
        if nW % d == 0 and (d * N) % 8 == 0:
            return d, nW                             # no padded garbage windows
    sub = 8 // math.gcd(N, 8)                        # fall back: sublane-align + pad
    wt = max(sub, (target_wt // sub) * sub)
    return wt, int(pl.cdiv(nW, wt)) * wt


# ---------------------------------------------------------------------------
# Wrapper
# ---------------------------------------------------------------------------
def shifted_window_attention_pallas(x, qkv_w, qkv_b, proj_w, proj_b,
                                    rpb_table, window_size, shift_size,
                                    num_heads, matmul_dtype=jnp.bfloat16):
    B, H, W, C = x.shape
    assert C % num_heads == 0, "embedding dim must be divisible by num_heads"
    wh, ww = window_size
    pad_r = (ww - W % ww) % ww
    pad_b = (wh - H % wh) % wh
    xp = jnp.pad(x, ((0, 0), (0, pad_b), (0, pad_r), (0, 0)))
    pH, pW = H + pad_b, W + pad_r

    sh, sw = shift_size
    if wh >= pH:
        sh = 0
    if ww >= pW:
        sw = 0
    if sh + sw > 0:
        xp = jnp.roll(xp, (-sh, -sw), axis=(1, 2))
    has_mask = (sh + sw) > 0

    nWh, nWw = pH // wh, pW // ww
    nW = nWh * nWw
    N = wh * ww
    hd = C // num_heads

    # ---- per-generation tile sizing + VMEM limit ---------------------------
    mm_bytes = jnp.dtype(matmul_dtype).itemsize
    out_bytes = jnp.dtype(x.dtype).itemsize
    cap = _vmem_capacity_bytes()
    per_row, fixed = _per_row_and_fixed_bytes(N, C, num_heads, has_mask,
                                              mm_bytes, out_bytes)
    WT, nW_pad = _choose_windows_per_tile(nW, N, per_row, fixed, int(0.55 * cap))
    est = per_row * WT * N + fixed
    vmem_limit = int(min(0.75 * cap, max(2 * est, 32 * 1024 * 1024)))

    # ---- window partition -> (B, nW_pad*N, C), cast activations once -------
    xw = xp.reshape(B, nWh, wh, nWw, ww, C).transpose(0, 1, 3, 2, 4, 5)
    xw = xw.reshape(B, nW, N, C)
    if nW_pad != nW:
        xw = jnp.pad(xw, ((0, 0), (0, nW_pad - nW), (0, 0), (0, 0)))
    xw = xw.reshape(B, nW_pad * N, C).astype(matmul_dtype)

    # ---- weight prep (one-time per-parameter work in a real model) ---------
    # fold 1/sqrt(hd) into the Q rows of qkv_w/qkv_b; cast matmul operands to
    # matmul_dtype; keep biases / rel-pos bias in f32 (f32 adds in-kernel).
    scale = 1.0 / float(hd) ** 0.5
    qkv_w_s = jnp.asarray(qkv_w).at[:C].multiply(scale).astype(matmul_dtype)
    qkv_b_s = jnp.asarray(qkv_b).at[:C].multiply(scale).astype(jnp.float32).reshape(1, 3 * C)
    proj_w_c = jnp.asarray(proj_w).astype(matmul_dtype)
    proj_b_c = jnp.asarray(proj_b).astype(jnp.float32).reshape(1, C)
    rpb = _relative_position_bias(rpb_table, window_size, num_heads).astype(jnp.float32)

    # TODO(synk): for C not a multiple of 128 (e.g. Swin stage-1 C=96) padding
    # C to 128 in this wrapper would make the o_ref store lane-dense; left
    # unpadded here since it trades bandwidth for lane density (measure).
    in_specs = [
        pl.BlockSpec((None, WT * N, C), lambda wt, b: (b, wt, 0)),     # x tile
        pl.BlockSpec((3 * C, C), lambda wt, b: (0, 0)),                # qkv_w (resident)
        pl.BlockSpec((1, 3 * C), lambda wt, b: (0, 0)),                # qkv_b (f32)
        pl.BlockSpec((num_heads, N, N), lambda wt, b: (0, 0, 0)),      # rel-pos bias
        pl.BlockSpec((C, C), lambda wt, b: (0, 0)),                    # proj_w (resident)
        pl.BlockSpec((1, C), lambda wt, b: (0, 0)),                    # proj_b (f32)
    ]
    args = [xw, qkv_w_s, qkv_b_s, rpb, proj_w_c, proj_b_c]
    if has_mask:
        mask_np = _shift_attn_mask(pH, pW, window_size, (sh, sw))
        if nW_pad != nW:
            mask_np = np.pad(mask_np, ((0, nW_pad - nW), (0, 0), (0, 0)))
        # mask block index constant across the inner batch grid axis
        in_specs.append(pl.BlockSpec((WT, N, N), lambda wt, b: (wt, 0, 0)))
        args.append(jnp.asarray(mask_np))

    kernel = partial(_window_attn_kernel, num_heads=num_heads,
                     windows_per_tile=WT, tokens_per_window=N,
                     matmul_dtype=matmul_dtype, has_mask=has_mask)

    out_w = pl.pallas_call(
        kernel,
        out_shape=jax.ShapeDtypeStruct((B, nW_pad * N, C), x.dtype),
        grid=(nW_pad // WT, B),                 # window-tile outer, batch inner
        in_specs=in_specs,
        out_specs=pl.BlockSpec((None, WT * N, C), lambda wt, b: (b, wt, 0)),
        compiler_params=pltpu.CompilerParams(
            dimension_semantics=("parallel", "parallel"),
            vmem_limit_bytes=vmem_limit),
    )(*args)

    # window merge (drop padded windows first)
    out = out_w.reshape(B, nW_pad, N, C)[:, :nW]
    out = out.reshape(B, nWh, nWw, wh, ww, C).transpose(0, 1, 3, 2, 4, 5)
    out = out.reshape(B, pH, pW, C)
    if sh + sw > 0:
        out = jnp.roll(out, (sh, sw), axis=(1, 2))
    return out[:, :H, :W, :]


# ---------------------------------------------------------------------------
# Pure-JAX reference (mirrors the PyTorch functional exactly)
# ---------------------------------------------------------------------------
def shifted_window_attention_ref(x, qkv_w, qkv_b, proj_w, proj_b,
                                 rpb_table, window_size, shift_size, num_heads):
    B, H, W, C = x.shape
    wh, ww = window_size
    pad_r = (ww - W % ww) % ww
    pad_b = (wh - H % wh) % wh
    xp = jnp.pad(x, ((0, 0), (0, pad_b), (0, pad_r), (0, 0)))
    pH, pW = H + pad_b, W + pad_r
    sh, sw = shift_size
    if wh >= pH:
        sh = 0
    if ww >= pW:
        sw = 0
    if sh + sw > 0:
        xp = jnp.roll(xp, (-sh, -sw), axis=(1, 2))
    nWh, nWw = pH // wh, pW // ww
    nW = nWh * nWw
    N = wh * ww
    xw = xp.reshape(B, nWh, wh, nWw, ww, C).transpose(0, 1, 3, 2, 4, 5)
    xw = xw.reshape(B * nW, N, C)

    qkv = xw @ qkv_w.T + qkv_b
    qkv = qkv.reshape(B * nW, N, 3, num_heads, C // num_heads).transpose(2, 0, 3, 1, 4)
    q, k, v = qkv[0], qkv[1], qkv[2]
    q = q * (C // num_heads) ** (-0.5)
    attn = q @ jnp.swapaxes(k, -2, -1)
    rpb = _relative_position_bias(rpb_table, window_size, num_heads)
    attn = attn + rpb[None]
    if sh + sw > 0:
        mask = jnp.asarray(_shift_attn_mask(pH, pW, window_size, (sh, sw)))
        attn = attn.reshape(B, nW, num_heads, N, N) + mask[None, :, None]
        attn = attn.reshape(-1, num_heads, N, N)
    attn = jax.nn.softmax(attn, axis=-1)
    out = jnp.swapaxes(attn @ v, 1, 2).reshape(B * nW, N, C)
    out = out @ proj_w.T + proj_b
    out = out.reshape(B, nWh, nWw, wh, ww, C).transpose(0, 1, 3, 2, 4, 5)
    out = out.reshape(B, pH, pW, C)
    if sh + sw > 0:
        out = jnp.roll(out, (sh, sw), axis=(1, 2))
    return out[:, :H, :W, :]


# ---------------------------------------------------------------------------
if __name__ == "__main__":
    # Small config: dim=8, window 4x4, shift 2x2, 2 heads, input (2, 10, 10, 8)
    dim = 8
    window_size = [4, 4]
    shift_size = [2, 2]
    num_heads = 2
    B, H, W = 2, 10, 10

    key = jax.random.PRNGKey(0)
    kx, kqw, kqb, kpw, kpb, ktab = jax.random.split(key, 6)

    x = jax.random.normal(kx, (B, H, W, dim), jnp.float32)
    qkv_w = 0.05 * jax.random.normal(kqw, (3 * dim, dim), jnp.float32)   # nn.Linear(dim, 3*dim).weight
    qkv_b = 0.05 * jax.random.normal(kqb, (3 * dim,), jnp.float32)
    proj_w = 0.05 * jax.random.normal(kpw, (dim, dim), jnp.float32)      # nn.Linear(dim, dim).weight
    proj_b = 0.05 * jax.random.normal(kpb, (dim,), jnp.float32)
    rpb_table = 0.02 * jax.random.normal(
        ktab, ((2 * window_size[0] - 1) * (2 * window_size[1] - 1), num_heads),
        jnp.float32)                                                     # trunc_normal(std=0.02) analogue

    ref = shifted_window_attention_ref(
        x, qkv_w, qkv_b, proj_w, proj_b, rpb_table,
        window_size, shift_size, num_heads)
    ref = jax.block_until_ready(ref)

    # 1) default bf16 matmul operands (MXU-native on v6e/v7x, half DMA bytes);
    #    tolerance covers bf16 operand rounding + approx softmax reciprocal.
    out_bf16 = shifted_window_attention_pallas(
        x, qkv_w, qkv_b, proj_w, proj_b, rpb_table,
        window_size, shift_size, num_heads)
    out_bf16 = jax.block_until_ready(out_bf16)
    assert out_bf16.shape == (B, H, W, dim), out_bf16.shape
    np.testing.assert_allclose(np.asarray(out_bf16), np.asarray(ref), atol=2e-2, rtol=2e-2)

    # 2) f32 matmul operands for a tight parity check (approx reciprocal only).
    out_f32 = shifted_window_attention_pallas(
        x, qkv_w, qkv_b, proj_w, proj_b, rpb_table,
        window_size, shift_size, num_heads, matmul_dtype=jnp.float32)
    out_f32 = jax.block_until_ready(out_f32)
    np.testing.assert_allclose(np.asarray(out_f32), np.asarray(ref), atol=2e-3, rtol=2e-3)

    # 3) non-shifted W-MSA layer exercises the mask-free kernel variant.
    ref_ns = shifted_window_attention_ref(
        x, qkv_w, qkv_b, proj_w, proj_b, rpb_table,
        window_size, [0, 0], num_heads)
    out_ns = shifted_window_attention_pallas(
        x, qkv_w, qkv_b, proj_w, proj_b, rpb_table,
        window_size, [0, 0], num_heads, matmul_dtype=jnp.float32)
    out_ns = jax.block_until_ready(out_ns)
    np.testing.assert_allclose(np.asarray(out_ns), np.asarray(ref_ns), atol=2e-3, rtol=2e-3)

    print("KERNEL_OK")
</pallas_src>

<mosaic_0001>
module attributes {stable_mosaic.version = 11 : i64} {
  func.func @_window_attn_kernel(%arg0: i32, %arg1: i32, %arg2: memref<1x144x8xbf16, #tpu.memory_space<vmem>>, %arg3: memref<24x8xbf16, #tpu.memory_space<vmem>>, %arg4: memref<1x24xf32, #tpu.memory_space<vmem>>, %arg5: memref<2x16x16xf32, #tpu.memory_space<vmem>>, %arg6: memref<8x8xbf16, #tpu.memory_space<vmem>>, %arg7: memref<1x8xf32, #tpu.memory_space<vmem>>, %arg8: memref<9x16x16xf32, #tpu.memory_space<vmem>>, %arg9: memref<1x144x8xf32, #tpu.memory_space<vmem>>) attributes {dimension_semantics = [#tpu.dimension_semantics<parallel>, #tpu.dimension_semantics<parallel>], iteration_bounds = array<i64: 1, 2>, scalar_prefetch = 0 : i64, scratch_operands = 0 : i64, tpu.core_type = #tpu.core_type<tc>, window_params = [{transform_indices = @transform_0, window_bounds = array<i64: 1, 144, 8>}, {pipeline_mode = #tpu.pipeline_mode<synchronous>, transform_indices = @transform_1, window_bounds = array<i64: 24, 8>}, {pipeline_mode = #tpu.pipeline_mode<synchronous>, transform_indices = @transform_2, window_bounds = array<i64: 1, 24>}, {pipeline_mode = #tpu.pipeline_mode<synchronous>, transform_indices = @transform_3, window_bounds = array<i64: 2, 16, 16>}, {pipeline_mode = #tpu.pipeline_mode<synchronous>, transform_indices = @transform_4, window_bounds = array<i64: 8, 8>}, {pipeline_mode = #tpu.pipeline_mode<synchronous>, transform_indices = @transform_5, window_bounds = array<i64: 1, 8>}, {transform_indices = @transform_6, window_bounds = array<i64: 9, 16, 16>}, {transform_indices = @transform_7, window_bounds = array<i64: 1, 144, 8>}]} {
    %c0 = arith.constant 0 : index
    %c0_0 = arith.constant 0 : index
    %c0_1 = arith.constant 0 : index
    %0 = vector.load %arg2[%c0, %c0_0, %c0_1] : memref<1x144x8xbf16, #tpu.memory_space<vmem>>, vector<1x144x8xbf16>
    %1 = vector.shape_cast %0 : vector<1x144x8xbf16> to vector<144x8xbf16>
    %c0_2 = arith.constant 0 : index
    %c0_3 = arith.constant 0 : index
    %2 = vector.load %arg3[%c0_2, %c0_3] : memref<24x8xbf16, #tpu.memory_space<vmem>>, vector<24x8xbf16>
    %cst = arith.constant dense<0.000000e+00> : vector<144x24xf32>
    %3 = tpu.matmul %1, %2, %cst {dimension_numbers = #tpu.dot_dimension_numbers<[1], [1], [0], [0], [0, 0, 1, 0], [], []>} : vector<144x8xbf16>, vector<24x8xbf16>, vector<144x24xf32> -> vector<144x24xf32>
    %c0_4 = arith.constant 0 : index
    %c0_5 = arith.constant 0 : index
    %4 = vector.load %arg4[%c0_4, %c0_5] : memref<1x24xf32, #tpu.memory_space<vmem>>, vector<1x24xf32>
    %5 = vector.broadcast %4 : vector<1x24xf32> to vector<144x24xf32>
    %6 = arith.addf %3, %5 : vector<144x24xf32>
    %7 = vector.shape_cast %6 : vector<144x24xf32> to vector<9x16x24xf32>
    %c0_6 = arith.constant 0 : index
    %c0_7 = arith.constant 0 : index
    %c0_8 = arith.constant 0 : index
    %8 = vector.load %arg8[%c0_6, %c0_7, %c0_8] : memref<9x16x16xf32, #tpu.memory_space<vmem>>, vector<9x16x16xf32>
    %cst_9 = arith.constant 0.000000e+00 : f32
    %9 = vector.broadcast %cst_9 : f32 to vector<144x8xf32>
    %10 = vector.extract_strided_slice %7 {offsets = [0, 0, 0], sizes = [9, 16, 4], strides = [1, 1, 1]} : vector<9x16x24xf32> to vector<9x16x4xf32>
    %11 = arith.truncf %10 : vector<9x16x4xf32> to vector<9x16x4xbf16>
    %12 = vector.extract_strided_slice %7 {offsets = [0, 0, 8], sizes = [9, 16, 4], strides = [1, 1, 1]} : vector<9x16x24xf32> to vector<9x16x4xf32>
    %13 = arith.truncf %12 : vector<9x16x4xf32> to vector<9x16x4xbf16>
    %14 = vector.extract_strided_slice %7 {offsets = [0, 0, 16], sizes = [9, 16, 4], strides = [1, 1, 1]} : vector<9x16x24xf32> to vector<9x16x4xf32>
    %15 = arith.truncf %14 : vector<9x16x4xf32> to vector<9x16x4xbf16>
    "tpu.trace_start"() <{level = 10 : i32, message = "wqd,wkd->wqk"}> : () -> ()
    %cst_10 = arith.constant dense<0.000000e+00> : vector<9x16x16xf32>
    %16 = tpu.matmul %11, %13, %cst_10 {dimension_numbers = #tpu.dot_dimension_numbers<[2], [2], [1], [1], [0, 0, 0, 1, 1, 1], [0], [0]>} : vector<9x16x4xbf16>, vector<9x16x4xbf16>, vector<9x16x16xf32> -> vector<9x16x16xf32>
    "tpu.trace_stop"() : () -> ()
    %c0_11 = arith.constant 0 : index
    %c0_12 = arith.constant 0 : index
    %c0_13 = arith.constant 0 : index
    %17 = vector.load %arg5[%c0_11, %c0_12, %c0_13] : memref<2x16x16xf32, #tpu.memory_space<vmem>>, vector<1x16x16xf32>
    %18 = vector.shape_cast %17 : vector<1x16x16xf32> to vector<16x16xf32>
    %19 = vector.shape_cast %18 : vector<16x16xf32> to vector<1x16x16xf32>
    %20 = vector.broadcast %19 : vector<1x16x16xf32> to vector<9x16x16xf32>
    %21 = arith.addf %16, %20 : vector<9x16x16xf32>
    %22 = arith.addf %21, %8 : vector<9x16x16xf32>
    %cst_14 = arith.constant dense<0xFF800000> : vector<9x16xf32>
    %23 = vector.multi_reduction <maximumf>, %22, %cst_14 [2] : vector<9x16x16xf32> to vector<9x16xf32>
    %24 = vector.shape_cast %23 : vector<9x16xf32> to vector<9x16x1xf32>
    %25 = vector.broadcast %24 : vector<9x16x1xf32> to vector<9x16x16xf32>
    %26 = arith.subf %22, %25 : vector<9x16x16xf32>
    %27 = math.exp %26 : vector<9x16x16xf32>
    %cst_15 = arith.constant dense<0.000000e+00> : vector<9x16xf32>
    %28 = vector.multi_reduction <add>, %27, %cst_15 [2] : vector<9x16x16xf32> to vector<9x16xf32>
    %29 = vector.shape_cast %28 : vector<9x16xf32> to vector<9x16x1xf32>
    %30 = tpu.reciprocal %29 {approx = true} : vector<9x16x1xf32> -> vector<9x16x1xf32>
    %31 = vector.broadcast %30 : vector<9x16x1xf32> to vector<9x16x16xf32>
    %32 = arith.mulf %27, %31 : vector<9x16x16xf32>
    %33 = arith.truncf %32 : vector<9x16x16xf32> to vector<9x16x16xbf16>
    "tpu.trace_start"() <{level = 10 : i32, message = "wqk,wkd->wqd"}> : () -> ()
    %cst_16 = arith.constant dense<0.000000e+00> : vector<9x16x4xf32>
    %34 = tpu.matmul %33, %15, %cst_16 {dimension_numbers = #tpu.dot_dimension_numbers<[2], [1], [1], [2], [0, 0, 0, 1, 1, 2], [0], [0]>} : vector<9x16x16xbf16>, vector<9x16x4xbf16>, vector<9x16x4xf32> -> vector<9x16x4xf32>
    "tpu.trace_stop"() : () -> ()
    %35 = vector.shape_cast %34 : vector<9x16x4xf32> to vector<144x4xf32>
    %36 = arith.truncf %35 : vector<144x4xf32> to vector<144x4xbf16>
    %c0_17 = arith.constant 0 : index
    %c0_18 = arith.constant 0 : index
    %37 = vector.load %arg6[%c0_17, %c0_18] : memref<8x8xbf16, #tpu.memory_space<vmem>>, vector<8x4xbf16>
    %cst_19 = arith.constant dense<0.000000e+00> : vector<144x8xf32>
    %38 = tpu.matmul %36, %37, %cst_19 {dimension_numbers = #tpu.dot_dimension_numbers<[1], [1], [0], [0], [0, 0, 1, 0], [], []>} : vector<144x4xbf16>, vector<8x4xbf16>, vector<144x8xf32> -> vector<144x8xf32>
    %39 = arith.addf %9, %38 : vector<144x8xf32>
    %40 = vector.extract_strided_slice %7 {offsets = [0, 0, 4], sizes = [9, 16, 4], strides = [1, 1, 1]} : vector<9x16x24xf32> to vector<9x16x4xf32>
    %41 = arith.truncf %40 : vector<9x16x4xf32> to vector<9x16x4xbf16>
    %42 = vector.extract_strided_slice %7 {offsets = [0, 0, 12], sizes = [9, 16, 4], strides = [1, 1, 1]} : vector<9x16x24xf32> to vector<9x16x4xf32>
    %43 = arith.truncf %42 : vector<9x16x4xf32> to vector<9x16x4xbf16>
    %44 = vector.extract_strided_slice %7 {offsets = [0, 0, 20], sizes = [9, 16, 4], strides = [1, 1, 1]} : vector<9x16x24xf32> to vector<9x16x4xf32>
    %45 = arith.truncf %44 : vector<9x16x4xf32> to vector<9x16x4xbf16>
    "tpu.trace_start"() <{level = 10 : i32, message = "wqd,wkd->wqk"}> : () -> ()
    %cst_20 = arith.constant dense<0.000000e+00> : vector<9x16x16xf32>
    %46 = tpu.matmul %41, %43, %cst_20 {dimension_numbers = #tpu.dot_dimension_numbers<[2], [2], [1], [1], [0, 0, 0, 1, 1, 1], [0], [0]>} : vector<9x16x4xbf16>, vector<9x16x4xbf16>, vector<9x16x16xf32> -> vector<9x16x16xf32>
    "tpu.trace_stop"() : () -> ()
    %c1 = arith.constant 1 : index
    %c0_21 = arith.constant 0 : index
    %c0_22 = arith.constant 0 : index
    %47 = vector.load %arg5[%c1, %c0_21, %c0_22] : memref<2x16x16xf32, #tpu.memory_space<vmem>>, vector<1x16x16xf32>
    %48 = vector.shape_cast %47 : vector<1x16x16xf32> to vector<16x16xf32>
    %49 = vector.shape_cast %48 : vector<16x16xf32> to vector<1x16x16xf32>
    %50 = vector.broadcast %49 : vector<1x16x16xf32> to vector<9x16x16xf32>
    %51 = arith.addf %46, %50 : vector<9x16x16xf32>
    %52 = arith.addf %51, %8 : vector<9x16x16xf32>
    %cst_23 = arith.constant dense<0xFF800000> : vector<9x16xf32>
    %53 = vector.multi_reduction <maximumf>, %52, %cst_23 [2] : vector<9x16x16xf32> to vector<9x16xf32>
    %54 = vector.shape_cast %53 : vector<9x16xf32> to vector<9x16x1xf32>
    %55 = vector.broadcast %54 : vector<9x16x1xf32> to vector<9x16x16xf32>
    %56 = arith.subf %52, %55 : vector<9x16x16xf32>
    %57 = math.exp %56 : vector<9x16x16xf32>
    %cst_24 = arith.constant dense<0.000000e+00> : vector<9x16xf32>
    %58 = vector.multi_reduction <add>, %57, %cst_24 [2] : vector<9x16x16xf32> to vector<9x16xf32>
    %59 = vector.shape_cast %58 : vector<9x16xf32> to vector<9x16x1xf32>
    %60 = tpu.reciprocal %59 {approx = true} : vector<9x16x1xf32> -> vector<9x16x1xf32>
    %61 = vector.broadcast %60 : vector<9x16x1xf32> to vector<9x16x16xf32>
    %62 = arith.mulf %57, %61 : vector<9x16x16xf32>
    %63 = arith.truncf %62 : vector<9x16x16xf32> to vector<9x16x16xbf16>
    "tpu.trace_start"() <{level = 10 : i32, message = "wqk,wkd->wqd"}> : () -> ()
    %cst_25 = arith.constant dense<0.000000e+00> : vector<9x16x4xf32>
    %64 = tpu.matmul %63, %45, %cst_25 {dimension_numbers = #tpu.dot_dimension_numbers<[2], [1], [1], [2], [0, 0, 0, 1, 1, 2], [0], [0]>} : vector<9x16x16xbf16>, vector<9x16x4xbf16>, vector<9x16x4xf32> -> vector<9x16x4xf32>
    "tpu.trace_stop"() : () -> ()
    %65 = vector.shape_cast %64 : vector<9x16x4xf32> to vector<144x4xf32>
    %66 = arith.truncf %65 : vector<144x4xf32> to vector<144x4xbf16>
    %c0_26 = arith.constant 0 : index
    %c4 = arith.constant 4 : index
    %67 = vector.load %arg6[%c0_26, %c4] : memref<8x8xbf16, #tpu.memory_space<vmem>>, vector<8x4xbf16>
    %cst_27 = arith.constant dense<0.000000e+00> : vector<144x8xf32>
    %68 = tpu.matmul %66, %67, %cst_27 {dimension_numbers = #tpu.dot_dimension_numbers<[1], [1], [0], [0], [0, 0, 1, 0], [], []>} : vector<144x4xbf16>, vector<8x4xbf16>, vector<144x8xf32> -> vector<144x8xf32>
    %69 = arith.addf %39, %68 : vector<144x8xf32>
    %c0_28 = arith.constant 0 : index
    %c0_29 = arith.constant 0 : index
    %70 = vector.load %arg7[%c0_28, %c0_29] : memref<1x8xf32, #tpu.memory_space<vmem>>, vector<1x8xf32>
    %71 = vector.broadcast %70 : vector<1x8xf32> to vector<144x8xf32>
    %72 = arith.addf %69, %71 : vector<144x8xf32>
    %c0_30 = arith.constant 0 : index
    %c0_31 = arith.constant 0 : index
    %c0_32 = arith.constant 0 : index
    %73 = vector.load %arg9[%c0_30, %c0_31, %c0_32] : memref<1x144x8xf32, #tpu.memory_space<vmem>>, vector<1x144x8xf32>
    %74 = vector.shape_cast %73 : vector<1x144x8xf32> to vector<144x8xf32>
    %75 = vector.shape_cast %72 : vector<144x8xf32> to vector<1x144x8xf32>
    tpu.vector_store %arg9[%c0_30, %c0_31, %c0_32], %75 {strides = array<i32>} : memref<1x144x8xf32, #tpu.memory_space<vmem>>, vector<1x144x8xf32>,
    return
  }
  func.func @transform_0(%arg0: i32, %arg1: i32) -> (i32, i32, i32) {
    %c0_i32 = arith.constant 0 : i32
    %c0_i32_0 = arith.constant 0 : i32
    return %arg1, %arg0, %c0_i32 : i32, i32, i32
  }
  func.func @transform_1(%arg0: i32, %arg1: i32) -> (i32, i32) {
    %c0_i32 = arith.constant 0 : i32
    %c0_i32_0 = arith.constant 0 : i32
    %c0_i32_1 = arith.constant 0 : i32
    return %c0_i32, %c0_i32_0 : i32, i32
  }
  func.func @transform_2(%arg0: i32, %arg1: i32) -> (i32, i32) {
    %c0_i32 = arith.constant 0 : i32
    %c0_i32_0 = arith.constant 0 : i32
    %c0_i32_1 = arith.constant 0 : i32
    return %c0_i32, %c0_i32_0 : i32, i32
  }
  func.func @transform_3(%arg0: i32, %arg1: i32) -> (i32, i32, i32) {
    %c0_i32 = arith.constant 0 : i32
    %c0_i32_0 = arith.constant 0 : i32
    %c0_i32_1 = arith.constant 0 : i32
    %c0_i32_2 = arith.constant 0 : i32
    return %c0_i32, %c0_i32_0, %c0_i32_1 : i32, i32, i32
  }
  func.func @transform_4(%arg0: i32, %arg1: i32) -> (i32, i32) {
    %c0_i32 = arith.constant 0 : i32
    %c0_i32_0 = arith.constant 0 : i32
    %c0_i32_1 = arith.constant 0 : i32
    return %c0_i32, %c0_i32_0 : i32, i32
  }
  func.func @transform_5(%arg0: i32, %arg1: i32) -> (i32, i32) {
    %c0_i32 = arith.constant 0 : i32
    %c0_i32_0 = arith.constant 0 : i32
    %c0_i32_1 = arith.constant 0 : i32
    return %c0_i32, %c0_i32_0 : i32, i32
  }
  func.func @transform_6(%arg0: i32, %arg1: i32) -> (i32, i32, i32) {
    %c0_i32 = arith.constant 0 : i32
    %c0_i32_0 = arith.constant 0 : i32
    %c0_i32_1 = arith.constant 0 : i32
    return %arg0, %c0_i32, %c0_i32_0 : i32, i32, i32
  }
  func.func @transform_7(%arg0: i32, %arg1: i32) -> (i32, i32, i32) {
    %c0_i32 = arith.constant 0 : i32
    %c0_i32_0 = arith.constant 0 : i32
    return %arg1, %arg0, %c0_i32 : i32, i32, i32
  }
}

</mosaic_0001>

<bundles_post_ra>
// kernel: tpu_custom_call.1
= control target key start
LH: loop header
LB: loop body
LE: loop exit
PB: predicated region body
PF: predicated region fallthrough
CT: control target
= control target key end

     0   :  { %12 = vsyncpa [#allocation3], 0  ;;  %s2717_s24 = smov 0   ;;  %s2719_s25 = smov 0   ;;  %s3693_s0 = inlined_call_operand.vmem [shape: bf16[2,144,8], index: 0, kind: input, shape index: {}]   ;;  %s3694_s1 = inlined_call_operand.vmem [shape: bf16[24,8], index: 1, kind: input, shape index: {}]   ;;  %s3695_s2 = inlined_call_operand.vmem [shape: f32[1,24], index: 2, kind: input, shape index: {}]   ;;  %s3696_s3 = inlined_call_operand.hbm [shape: f32[2,16,16], index: 3, kind: input, shape index: {}]   ;;  %s3697_s4 = inlined_call_operand.vmem [shape: bf16[8,8], index: 4, kind: input, shape index: {}]   ;;  %s3698_s5 = inlined_call_operand.vmem [shape: f32[1,8], index: 5, kind: input, shape index: {}]   ;;  %s3699_s6 = inlined_call_operand.vmem [shape: f32[9,16,16], index: 6, kind: input, shape index: {}]   ;;  %s3700_s7 = inlined_call_operand.vmem [shape: f32[2,144,8], index: 7, kind: output, shape index: {}]  }
   0x1   :  { %s2721_s26 = smov 0  }
   0x2 LB: > { %s2294_s27 = sadd.s32 4294967295, %s2667_s26   ;;  %s27_s28 = sadd.s32 1, %s2663_s25  ;;  %s2667_s26 = sphi %s2721_s26, %s18_s26   ;;  %s2663_s25 = sphi %s2719_s25, %s3702_s25   ;;  %s2659_s24 = sphi %s2717_s24, %s3701_s24  }
   0x3   : > { %p28_p0 = scmp.ge.s32.totalorder %s27_s28, 2  ;;  %p2296_p1 = scmp.ge.s32.totalorder %s2667_s26, 1 }
   0x4   : > { %p222_p2 = scmp.lt.s32.totalorder %s2667_s26, 3  ;;  %p2431_p4 = scmp.eq.s32.totalorder %s2294_s27, 0 }
   0x5   : > { %s3704_s28 = smov (%p28_p0, %s27_s28), 0  ;;  %s239_s8 = sshll.u32 %s3696_s3, 4  ;;  %s240_s8 = int_to_ptr.hbm [resolvable:$true] %s239_s8 }
   0x6   : > { %p223_p3 = pnand %p2296_p1, %p222_p2  ;;  %s2669_s9 = smov [#allocation2]  }
   0x7   : > { %s241_s10 = sshll.u32 %s2669_s9, 4  ;;  %s2670_s11 = smov 128   ;;  %s242_s10 = int_to_ptr.vmem [resolvable:$true] %s241_s10 }
   0x8   : > { %p2427_p5 = pneg %p223_p3  ;;  %s2671_s12 = smov 8  }
   0x9   : > { %286 = sbr.rel (%p223_p3) target bundleno = 1707 (0x6ab), region = 48 }
   0xa   : > { %p2428_p6 = pnand %p2431_p4, %p2427_p5 }
   0xc   : > { %2430 = dma.hbm_to_vmem [thread:$0]  (!%p2428_p6), %s240_s8, 512, %s242_s10, [#allocation3], %s2670_s11, %s2670_s11, %s2671_s12  }
   0xe   : > { %2654 = dma.done.wait (%p2431_p4), [#allocation3], 512  }
   0xf   : > { %2656 = vsyncadd (%p2431_p4), [#allocation3], 4294966784  ;;  %v381_v0 = vld [vmem:[%s3694_s1 + $0x8] sm:$0xf]  ;;  %vm439_vm0 = vcmask 64512   ;;  %p334_p7 = scmp.lt.s32.totalorder %s2659_s24, 1 }
  0x10   : > { %v436_v1 = vunpack.c.l.b16 %v381_v0  ;;  %v2418_v4 = vld [vmem:[%s3694_s1] sm:$0xff]  ;;  %s2672_s23 = smov 120   ;;  %s2673_s27 = smov 112   ;;  %vm572_vm1 = vcmask 31744   ;;  %vm827_vm2 = vcmask 130048  }
  0x11   : > { %s3706_s24 = smov (!%p334_p7, %s2659_s24), 1  ;;  %v468_v5 = vsel %vm439_vm0, %v2418_v4, 0  ;;  %v2768_v16 = vld [vmem:[%s3695_s2] ss:$0 sm:$0xff]  ;;  %s2674_s29 = smov 124  }
  0x12   : > { %v438_v2 = vpack.c.b16 %v436_v1, %v436_v1  ;;  %s2421_s17 = smul.u32 72, %s3706_s24  ;;  %s2675_s30 = smov 116  }
  0x13   : > { %s2676_s10 = smov 108   ;;  %s2422_s13 = smul.u32 144, %s3706_s24 }
  0x14   : > { %v471_v3 = vsel %vm439_vm0, %v438_v2, 0  ;;  %s341_s20 = scalar_lea.vmem %s3693_s0, %s2421_s17 }
  0x15   : > { %479 = vmatpush.bf16.xpose.msra.mxu0 %v471_v3  ;;  %v2409_v6 = vld [vmem:[%s341_s20] sm:$0xff]  ;;  %v2410_v7 = vld [vmem:[%s341_s20 + $0x8] sm:$0xff]  ;;  %v2411_v8 = vld [vmem:[%s341_s20 + $0x10] sm:$0xff]  ;;  %s3627_s18 = scalar_lea.vmem %s3700_s7, %s2422_s13 }
  0x16   : > { %v2412_v9 = vld [vmem:[%s341_s20 + $0x18] sm:$0xff]  ;;  %v2413_v10 = vld [vmem:[%s341_s20 + $0x20] sm:$0xff]  ;;  %v2414_v11 = vld [vmem:[%s341_s20 + $0x28] sm:$0xff] }
  0x17   : > { %v2415_v12 = vld [vmem:[%s341_s20 + $0x30] sm:$0xff]  ;;  %v2416_v13 = vld [vmem:[%s341_s20 + $0x38] sm:$0xff]  ;;  %v2417_v14 = vld [vmem:[%s341_s20 + $0x40] sm:$0xff] }
  0x1d   : > { %480 = vmatpush.bf16.xpose.msra.mxu0 %v468_v5 }
  0x24   : > { %2344 = vmatmul.msk.bf16.vlgmr.msra.gmra.mxu0 %vm439_vm0, %v2409_v6 }
  0x34   : > { %2345 = vmatmul.msk.bf16.gmra.mxu0 %vm439_vm0, %v2410_v7 }
  0x44   : > { %2346 = vmatmul.msk.bf16.gmra.mxu0 %vm439_vm0, %v2411_v8 }
  0x54   : > { %2347 = vmatmul.msk.bf16.gmra.mxu0 %vm439_vm0, %v2412_v9 }
  0x64   : > { %2348 = vmatmul.msk.bf16.gmra.mxu0 %vm439_vm0, %v2413_v10 }
  0x74   : > { %2349 = vmatmul.msk.bf16.gmra.mxu0 %vm439_vm0, %v2414_v11 }
  0x84   : > { %2350 = vmatmul.msk.bf16.gmra.mxu0 %vm439_vm0, %v2415_v12 }
  0x94   : > { %2351 = vmatmul.msk.bf16.gmra.mxu0 %vm439_vm0, %v2416_v13 }
  0xa1   : > { %v482_v15 = vpop.f32.mrf.mxu0 }
  0xa2   : > { %v483_v17 = vadd.f32 %v2768_v16, %v482_v15 }
  0xa4   : > { %2352 = vmatmul.msk.bf16.gmra.mxu0 %vm439_vm0, %v2417_v14  ;;  %v545_v19 = vpack.c.bf16 %v483_v17, %v483_v17 }
  0xa6   : > { %v567_v22 = vunpack.c.l.b16 %v545_v19 }
  0xa9   : > { %v484_v18 = vpop.f32.mrf.mxu0 }
  0xaa   : > { %v485_v20 = vadd.f32 %v2768_v16, %v484_v18 }
  0xac   : > { %v546_v21 = vpack.c.bf16 %v485_v20, %v485_v20 }
  0xae   : > { %v568_v23 = vunpack.c.l.b16 %v546_v21 }
  0xb0   : > { %v2773_v24 = vpack.c.b16 %v568_v23, %v567_v22 }
  0xb1   : > { %v487_v25 = vpop.f32.mrf.mxu0 }
  0xb2   : > { %570 = vrot.lane.b32.xlu1 %v2773_v24, %s2672_s23  ;;  %v488_v26 = vadd.f32 %v2768_v16, %v487_v25 }
  0xb4   : > { %v547_v28 = vpack.c.bf16 %v488_v26, %v488_v26 }
  0xb6   : > { %v595_v31 = vunpack.c.l.b16 %v547_v28 }
  0xb9   : > { %v489_v27 = vpop.f32.mrf.mxu0 }
  0xba   : > { %v490_v29 = vadd.f32 %v2768_v16, %v489_v27 }
  0xbc   : > { %v548_v30 = vpack.c.bf16 %v490_v29, %v490_v29 }
  0xbe   : > { %v596_v32 = vunpack.c.l.b16 %v548_v30 }
  0xc0   : > { %v2779_v33 = vpack.c.b16 %v596_v32, %v595_v31 }
  0xc1   : > { %v492_v34 = vpop.f32.mrf.mxu0 }
  0xc2   : > { %598 = vrot.lane.b32.xlu0 %v2779_v33, %s2672_s23  ;;  %v493_v35 = vadd.f32 %v2768_v16, %v492_v34 }
  0xc4   : > { %v549_v37 = vpack.c.bf16 %v493_v35, %v493_v35 }
  0xc6   : > { %v622_v40 = vunpack.c.l.b16 %v549_v37 }
  0xc9   : > { %v494_v36 = vpop.f32.mrf.mxu0 }
  0xca   : > { %v495_v38 = vadd.f32 %v2768_v16, %v494_v36 }
  0xcc   : > { %v550_v39 = vpack.c.bf16 %v495_v38, %v495_v38 }
  0xce   : > { %v623_v41 = vunpack.c.l.b16 %v550_v39 }
  0xd0   : > { %v2785_v42 = vpack.c.b16 %v623_v41, %v622_v40 }
  0xd1   : > { %v497_v43 = vpop.f32.mrf.mxu0 }
  0xd2   : > { %625 = vrot.lane.b32.xlu0 %v2785_v42, %s2672_s23  ;;  %v498_v61 = vadd.f32 %v2768_v16, %v497_v43 }
  0xd4   : > { %v551_v3 = vpack.c.bf16 %v498_v61, %v498_v61  ;;  %v2879_v61 = vld [vmem:[%s3699_s6] sm:$0xff] }
  0xd6   : > { %v649_v5 = vunpack.c.l.b16 %v551_v3 }
  0xd9   : > { %v499_v44 = vpop.f32.mrf.mxu0 }
  0xda   : > { %v500_v59 = vadd.f32 %v2768_v16, %v499_v44 }
  0xdc   : > { %v552_v0 = vpack.c.bf16 %v500_v59, %v500_v59  ;;  %v2874_v59 = vld [vmem:[#allocation2] sm:$0xff] }
  0xde   : > { %v650_v4 = vunpack.c.l.b16 %v552_v0 }
  0xe0   : > { %v2804_v7 = vpack.c.b16 %v650_v4, %v649_v5  ;;  %v2889_v4 = vld [vmem:[#allocation2 + $0x8] sm:$0xff] }
  0xe1   : > { %v502_v45 = vpop.f32.mrf.mxu0 }
  0xe2   : > { %v503_v46 = vadd.f32 %v2768_v16, %v502_v45 }
  0xe4   : > { %v553_v48 = vpack.c.bf16 %v503_v46, %v503_v46 }
  0xe6   : > { %v676_v51 = vunpack.c.l.b16 %v553_v48 }
  0xe9   : > { %v504_v47 = vpop.f32.mrf.mxu0 }
  0xea   : > { %v505_v49 = vadd.f32 %v2768_v16, %v504_v47 }
  0xec   : > { %v554_v50 = vpack.c.bf16 %v505_v49, %v505_v49 }
  0xee   : > { %v677_v52 = vunpack.c.l.b16 %v554_v50 }
  0xf0   : > { %v2791_v53 = vpack.c.b16 %v677_v52, %v676_v51 }
  0xf1   : > { %v507_v54 = vpop.f32.mrf.mxu0 }
  0xf2   : > { %679 = vrot.lane.b32.xlu1 %v2791_v53, %s2672_s23  ;;  %v508_v55 = vadd.f32 %v2768_v16, %v507_v54 }
  0xf4   : > { %v555_v57 = vpack.c.bf16 %v508_v55, %v508_v55 }
  0xf6   : > { %v703_v62 = vunpack.c.l.b16 %v555_v57 }
  0xf9   : > { %v509_v56 = vpop.f32.mrf.mxu0 }
  0xfa   : > { %v510_v58 = vadd.f32 %v2768_v16, %v509_v56 }
  0xfc   : > { %v556_v60 = vpack.c.bf16 %v510_v58, %v510_v58 }
  0xfe   : > { %v704_v63 = vunpack.c.l.b16 %v556_v60 }
 0x100   : > { %v2799_v1 = vpack.c.b16 %v704_v63, %v703_v62 }
 0x101   : > { %v512_v2 = vpop.f32.mrf.mxu0 }
 0x102   : > { %706 = vrot.lane.b32.xlu2 %v2799_v1, %s2672_s23  ;;  %v513_v6 = vadd.f32 %v2768_v16, %v512_v2 }
 0x104   : > { %v557_v9 = vpack.c.bf16 %v513_v6, %v513_v6  ;;  %v2894_v6 = vld [vmem:[%s3699_s6 + $0x8] sm:$0xff] }
 0x106   : > { %v730_v12 = vunpack.c.l.b16 %v557_v9 }
 0x109   : > { %v514_v8 = vpop.f32.mrf.mxu0 }
 0x10a   : > { %v515_v10 = vadd.f32 %v2768_v16, %v514_v8  ;;  %652 = vrot.lane.b32.xlu2 %v2804_v7, %s2672_s23 }
 0x10c   : > { %v558_v11 = vpack.c.bf16 %v515_v10, %v515_v10 }
 0x10e   : > { %v731_v13 = vunpack.c.l.b16 %v558_v11 }
 0x110   : > { %v2809_v14 = vpack.c.b16 %v731_v13, %v730_v12  ;;  %v2905_v12 = vld [vmem:[%s3699_s6 + $0x10] sm:$0xff] }
 0x111   : > { %v517_v15 = vpop.f32.mrf.mxu0 }
 0x112   : > { %733 = vrot.lane.b32.xlu2 %v2809_v14, %s2672_s23  ;;  %v518_v17 = vadd.f32 %v2768_v16, %v517_v15 }
 0x114   : > { %v559_v19 = vpack.c.bf16 %v518_v17, %v518_v17 }
 0x116   : > { %v757_v22 = vunpack.c.l.b16 %v559_v19  ;;  %v2916_v19 = vld [vmem:[%s3699_s6 + $0x18] sm:$0xff] }
 0x119   : > { %v519_v18 = vpop.f32.mrf.mxu0 }
 0x11a   : > { %v520_v20 = vadd.f32 %v2768_v16, %v519_v18  ;;  %1074 = vrot.lane.b32.xlu2 %v2779_v33, %s2673_s27 }
 0x11c   : > { %v560_v21 = vpack.c.bf16 %v520_v20, %v520_v20 }
 0x11e   : > { %v758_v23 = vunpack.c.l.b16 %v560_v21 }
 0x120   : > { %v2817_v25 = vpack.c.b16 %v758_v23, %v757_v22 }
 0x121   : > { %v522_v26 = vpop.f32.mrf.mxu0 }
 0x122   : > { %1099 = vrot.lane.b32.xlu2 %v2785_v42, %s2673_s27  ;;  %760 = vrot.lane.b32.xlu0 %v2817_v25, %s2672_s23  ;;  %v523_v27 = vadd.f32 %v2768_v16, %v522_v26  ;;  %v2927_v26 = vld [vmem:[%s3699_s6 + $0x20] sm:$0xff] }
 0x124   : > { %v571_v28 = vpop.permute.xlu1 %570  ;;  %v561_v30 = vpack.c.bf16 %v523_v27, %v523_v27 }
 0x125   : > { %v577_v29 = vsel %vm572_vm1, %v571_v28, 0 }
 0x126   : > { %586 = vmatpush.bf16.xpose.msra.mxu1 %v577_v29  ;;  %v784_v34 = vunpack.c.l.b16 %v561_v30 }
 0x129   : > { %v524_v31 = vpop.f32.mrf.mxu0 }
 0x12a   : > { %v525_v32 = vadd.f32 %v2768_v16, %v524_v31  ;;  %1149 = vrot.lane.b32.xlu2 %v2791_v53, %s2673_s27  ;;  %1049 = vrot.lane.b32.xlu0 %v2773_v24, %s2673_s27  ;;  %v2938_v31 = vld [vmem:[%s3699_s6 + $0x28] sm:$0xff] }
 0x12c   : > { %v562_v35 = vpack.c.bf16 %v525_v32, %v525_v32 }
 0x12d   : > { %2353 = vmatmul.msk.bf16.vlgmr.msra.gmra.mxu1 %vm572_vm1, %v2773_v24 }
 0x12e   : > { %v785_v36 = vunpack.c.l.b16 %v562_v35 }
 0x130   : > { %v2832_v37 = vpack.c.b16 %v785_v36, %v784_v34 }
 0x132   : > { %1224 = vrot.lane.b32.xlu2 %v2817_v25, %s2673_s27  ;;  %1174 = vrot.lane.b32.xlu0 %v2799_v1, %s2673_s27 }
 0x133   : > { %787 = vrot.lane.b32.xlu1 %v2832_v37, %s2672_s23 }
 0x134   : > { %v599_v16 = vpop.permute.xlu0 %598 }
 0x135   : > { %v604_v38 = vsel %vm572_vm1, %v599_v16, 0 }
 0x136   : > { %613 = vmatpush.bf16.xpose.msra.mxu2 %v604_v38  ;;  %v2949_v38 = vld [vmem:[%s3699_s6 + $0x30] sm:$0xff] }
 0x13a   : > { %1306 = vrot.lane.b32.xlu2 %v2779_v33, %s2674_s29  ;;  %1199 = vrot.lane.b32.xlu0 %v2809_v14, %s2673_s27 }
 0x13b   : > { %1124 = vrot.lane.b32.xlu1 %v2804_v7, %s2673_s27 }
 0x13d   : > { %2354 = vmatmul.msk.bf16.vlgmr.msra.gmra.mxu2 %vm572_vm1, %v2779_v33 }
 0x142   : > { %1284 = vrot.lane.b32.xlu0 %v2773_v24, %s2675_s30 }
 0x143   : > { %1308 = vrot.lane.b32.xlu1 %v2779_v33, %s2675_s30 }
 0x144   : > { %v626_v39 = vpop.permute.xlu0 %625 }
 0x145   : > { %v631_v40 = vsel %vm572_vm1, %v626_v39, 0 }
 0x146   : > { %640 = vmatpush.bf16.xpose.msra.mxu3 %v631_v40 }
 0x14a   : > { %1249 = vrot.lane.b32.xlu0 %v2832_v37, %s2673_s27 }
 0x14d   : > { %2355 = vmatmul.msk.bf16.vlgmr.msra.gmra.mxu3 %vm572_vm1, %v2785_v42 }
 0x15c   : > { %v707_v41 = vpop.permute.xlu2 %706 }
 0x15d   : > { %v712_v43 = vsel %vm572_vm1, %v707_v41, 0 }
 0x15e   : > { %721 = vmatpush.bf16.xpose.msrb.mxu3 %v712_v43 }
 0x164   : > { %v653_v44 = vpop.permute.xlu2 %652  ;;  %v680_v45 = vpop.permute.xlu1 %679 }
 0x165   : > { %2358 = vmatmul.msk.bf16.vlgmr.msrb.gmra.mxu3 %vm572_vm1, %v2799_v1  ;;  %v658_v46 = vsel %vm572_vm1, %v653_v44, 0  ;;  %v685_v47 = vsel %vm572_vm1, %v680_v45, 0  ;;  %v2960_v45 = vld [vmem:[%s3699_s6 + $0x58] sm:$0xff] }
 0x166   : > { %667 = vmatpush.bf16.xpose.msrb.mxu1 %v658_v46  ;;  %694 = vmatpush.bf16.xpose.msrb.mxu2 %v685_v47 }
 0x16c   : > { %v734_v48 = vpop.permute.xlu2 %733 }
 0x16d   : > { %v739_v49 = vsel %vm572_vm1, %v734_v48, 0  ;;  %2356 = vmatmul.msk.bf16.vlgmr.msrb.gmra.mxu1 %vm572_vm1, %v2804_v7  ;;  %2357 = vmatmul.msk.bf16.vlgmr.msrb.gmra.mxu2 %vm572_vm1, %v2791_v53  ;;  %v2966_v48 = vld [vmem:[%s3699_s6 + $0x38] sm:$0xff] }
 0x16e   : > { %748 = vmatpush.bf16.xpose.msra.mxu1 %v739_v49 }
 0x174   : > { %v1075_v50 = vpop.permute.xlu2 %1074 }
 0x17c   : > { %v1100_v51 = vpop.permute.xlu2 %1099 }
 0x17d   : > { %2359 = vmatmul.msk.bf16.vlgmr.msra.gmra.mxu1 %vm572_vm1, %v2809_v14 }
 0x184   : > { %v1150_v56 = vpop.permute.xlu2 %1149 }
 0x194   : > { %v761_v52 = vpop.permute.xlu0 %760 }
 0x195   : > { %v766_v54 = vsel %vm572_vm1, %v761_v52, 0 }
 0x196   : > { %775 = vmatpush.bf16.xpose.msra.mxu2 %v766_v54 }
 0x19c   : > { %v1050_v55 = vpop.permute.xlu0 %1049 }
 0x19d   : > { %2360 = vmatmul.msk.bf16.vlgmr.msra.gmra.mxu2 %vm572_vm1, %v2817_v25  ;;  %1062 = vmatpush.bf16.msrb.mxu1 %v1050_v55 }
 0x19e   : > { %1087 = vmatpush.bf16.msrb.mxu2 %v1075_v50 }
 0x1a2   : > { %1162 = vmatpush.bf16.msra.mxu2 %v1150_v56 }
 0x1a4   : > { %v1175_v2 = vpop.permute.xlu0 %1174 }
 0x1a5   : > { %v788_v57 = vpop.permute.xlu1 %787 }
 0x1a6   : > { %v793_v58 = vsel %vm572_vm1, %v788_v57, 0  ;;  %v2983_v57 = vld [vmem:[%s3699_s6 + $0x48] sm:$0xff] }
 0x1a7   : > { %802 = vmatpush.bf16.xpose.msra.mxu3 %v793_v58  ;;  %v2988_v58 = vld [vmem:[%s3699_s6 + $0x40] sm:$0xff] }
 0x1aa   : > { %v588_v60 = vpop.f32.mrf.mxu1 }
 0x1ab   : > { %v589_v62 = vadd.f32 %v588_v60, %v2874_v59 }
 0x1ad   : > { %v1125_v63 = vpop.permute.xlu1 %1124  ;;  %v2883_v0 = vadd.f32 %v589_v62, %v2879_v61 }
 0x1ae   : > { %2361 = vmatmul.msk.bf16.vlgmr.msra.gmra.mxu3 %vm572_vm1, %v2832_v37  ;;  %1137 = vmatpush.bf16.msra.mxu1 %v1125_v63  ;;  %v2994_v63 = vld [vmem:[%s3699_s6 + $0x60] sm:$0xff] }
 0x1af   : > { %1112 = vmatpush.bf16.msrb.mxu3 %v1100_v51  ;;  %v828_v3 = vsel %vm827_vm2, %v2883_v0, -inf }
 0x1b0   : > { %829 = vmax.xlane.f32.xlu2 %v828_v3 }
 0x1b2   : > { %v590_v5 = vpop.f32.mrf.mxu1 }
 0x1b3   : > { %1187 = vmatpush.bf16.msra.mxu3 %v1175_v2  ;;  %v591_v8 = vadd.f32 %v590_v5, %v2889_v4 }
 0x1b5   : > { %v2898_v9 = vadd.f32 %v591_v8, %v2894_v6 }
 0x1b7   : > { %v831_v10 = vsel %vm827_vm2, %v2898_v9, -inf }
 0x1b8   : > { %832 = vmax.xlane.f32.xlu2 %v831_v10 }
 0x1c0   : > { %v615_v11 = vpop.f32.mrf.mxu2 }
 0x1c1   : > { %v616_v13 = vadd.f32 %v615_v11, %v2874_v59 }
 0x1c3   : > { %v2909_v15 = vadd.f32 %v616_v13, %v2905_v12  ;;  %v3012_v13 = vld [vmem:[%s3699_s6 + $0x50] sm:$0xff] }
 0x1c5   : > { %v834_v17 = vsel %vm827_vm2, %v2909_v15, -inf }
 0x1c6   : > { %835 = vmax.xlane.f32.xlu0 %v834_v17 }
 0x1c8   : > { %v617_v18 = vpop.f32.mrf.mxu2 }
 0x1c9   : > { %v618_v20 = vadd.f32 %v617_v18, %v2889_v4 }
 0x1cb   : > { %v2920_v21 = vadd.f32 %v618_v20, %v2916_v19 }
 0x1cd   : > { %v837_v22 = vsel %vm827_vm2, %v2920_v21, -inf }
 0x1ce   : > { %838 = vmax.xlane.f32.xlu1 %v837_v22 }
 0x1d0   : > { %v642_v23 = vpop.f32.mrf.mxu3 }
 0x1d1   : > { %v643_v27 = vadd.f32 %v642_v23, %v2874_v59  ;;  %v3024_v23 = vld [vmem:[%s3699_s6 + $0x68] sm:$0xff] }
 0x1d3   : > { %v2931_v28 = vadd.f32 %v643_v27, %v2927_v26 }
 0x1d5   : > { %v840_v29 = vsel %vm827_vm2, %v2931_v28, -inf }
 0x1d6   : > { %841 = vmax.xlane.f32.xlu0 %v840_v29 }
 0x1d8   : > { %v644_v30 = vpop.f32.mrf.mxu3 }
 0x1d9   : > { %v645_v32 = vadd.f32 %v644_v30, %v2889_v4 }
 0x1db   : > { %v2942_v34 = vadd.f32 %v645_v32, %v2938_v31 }
 0x1dd   : > { %v843_v35 = vsel %vm827_vm2, %v2942_v34, -inf }
 0x1de   : > { %844 = vmax.xlane.f32.xlu1 %v843_v35  ;;  %v3034_v35 = vpop.permute.xlu2 %1224 }
 0x1e8   : > { %v723_v36 = vpop.f32.mrf.mxu3 }
 0x1e9   : > { %v724_v8 = vadd.f32 %v723_v36, %v2874_v59  ;;  %v3036_v36 = vpop.permute.xlu2 %1306 }
 0x1ea   : > { %v669_v16 = vpop.f32.mrf.mxu1 }
 0x1eb   : > { %v670_v39 = vadd.f32 %v669_v16, %v2874_v59  ;;  %v3019_v20 = vadd.f32 %v724_v8, %v3012_v13  ;;  %v3038_v16 = vpop.permute.xlu0 %1199 }
 0x1ed   : > { %v2953_v40 = vadd.f32 %v670_v39, %v2949_v38  ;;  %v858_v29 = vsel %vm827_vm2, %v3019_v20, -inf }
 0x1ef   : > { %v846_v41 = vsel %vm827_vm2, %v2953_v40, -inf }
 0x1f0   : > { %v725_v43 = vpop.f32.mrf.mxu3  ;;  %847 = vmax.xlane.f32.xlu1 %v846_v41  ;;  %v696_v44 = vpop.f32.mrf.mxu2  ;;  %v3043_v41 = vld [vmem:[%s3699_s6 + $0x70] sm:$0xff] }
 0x1f1   : > { %v726_v46 = vadd.f32 %v725_v43, %v2889_v4  ;;  %v697_v52 = vadd.f32 %v696_v44, %v2874_v59 }
 0x1f2   : > { %v671_v47 = vpop.f32.mrf.mxu1 }
 0x1f3   : > { %v672_v49 = vadd.f32 %v671_v47, %v2889_v4  ;;  %v2970_v50 = vadd.f32 %v726_v46, %v2960_v45  ;;  %v3001_v5 = vadd.f32 %v697_v52, %v2988_v58 }
 0x1f5   : > { %v2973_v51 = vadd.f32 %v672_v49, %v2966_v48  ;;  %v861_v54 = vsel %vm827_vm2, %v2970_v50, -inf  ;;  %v852_v18 = vsel %vm827_vm2, %v3001_v5, -inf }
 0x1f7   : > { %v849_v55 = vsel %vm827_vm2, %v2973_v51, -inf }
 0x1f8   : > { %862 = vmax.xlane.f32.xlu1 %v861_v54  ;;  %850 = vmax.xlane.f32.xlu2 %v849_v55  ;;  %v698_v56 = vpop.f32.mrf.mxu2  ;;  %v3055_v55 = vld [vmem:[%s3699_s6 + $0x78] sm:$0xff] }
 0x1f9   : > { %v699_v60 = vadd.f32 %v698_v56, %v2889_v4  ;;  %v3057_v56 = vpop.permute.xlu0 %1284 }
 0x1fa   : > { %v750_v62 = vpop.f32.mrf.mxu1 }
 0x1fb   : > { %v751_v2 = vadd.f32 %v750_v62, %v2874_v59  ;;  %v2998_v3 = vadd.f32 %v699_v60, %v2983_v57 }
 0x1fd   : > { %v855_v10 = vsel %vm827_vm2, %v2998_v3, -inf  ;;  %v3007_v11 = vadd.f32 %v751_v2, %v2994_v63 }
 0x1fe   : > { %856 = vmax.xlane.f32.xlu0 %v855_v10 }
 0x1ff   : > { %v864_v17 = vsel %vm827_vm2, %v3007_v11, -inf }
 0x200   : > { %865 = vmax.xlane.f32.xlu1 %v864_v17  ;;  %853 = vmax.xlane.f32.xlu2 %v852_v18 }
 0x202   : > { %v752_v22 = vpop.f32.mrf.mxu1 }
 0x203   : > { %v753_v27 = vadd.f32 %v752_v22, %v2889_v4  ;;  %v3070_v22 = vpop.permute.xlu0 %1249 }
 0x205   : > { %v3030_v30 = vadd.f32 %v753_v27, %v3024_v23 }
 0x206   : > { %859 = vmax.xlane.f32.xlu0 %v858_v29 }
 0x207   : > { %v867_v32 = vsel %vm827_vm2, %v3030_v30, -inf }
 0x208   : > { %868 = vmax.xlane.f32.xlu2 %v867_v32 }
 0x220   : > { %v777_v39 = vpop.f32.mrf.mxu2 }
 0x221   : > { %v778_v43 = vadd.f32 %v777_v39, %v2874_v59 }
 0x223   : > { %v830_v44 = vpop.xlane.xlu2 %829  ;;  %v3047_v46 = vadd.f32 %v778_v43, %v3043_v41  ;;  %v3079_v43 = vld [vmem:[%s3699_s6 + $0x88] sm:$0xff] }
 0x224   : > { %v882_v47 = vsub.f32 %v2883_v0, %v830_v44 }
 0x225   : > { %v870_v49 = vsel %vm827_vm2, %v3047_v46, -inf }
 0x226   : > { %v900_v52 = vmul.f32 1.442695, %v882_v47  ;;  %871 = vmax.xlane.f32.xlu2 %v870_v49 }
 0x228   : > { %2467 = vpow2.f32 %v900_v52  ;;  %v779_v54 = vpop.f32.mrf.mxu2 }
 0x229   : > { %v780_v60 = vadd.f32 %v779_v54, %v2889_v4 }
 0x22b   : > { %v833_v62 = vpop.xlane.xlu2 %832  ;;  %v3061_v2 = vadd.f32 %v780_v60, %v3055_v55  ;;  %v3088_v60 = vpop.permute.xlu1 %1308 }
 0x22c   : > { %v883_v0 = vsub.f32 %v2898_v9, %v833_v62 }
 0x22d   : > { %v873_v8 = vsel %vm827_vm2, %v3061_v2, -inf }
 0x22e   : > { %v3066_v10 = vpop.eup %2467  ;;  %v902_v17 = vmul.f32 1.442695, %v883_v0  ;;  %874 = vmax.xlane.f32.xlu0 %v873_v8 }
 0x22f   : > { %v936_v18 = vsel %vm827_vm2, %v3066_v10, 0.0 }
 0x230   : > { %2469 = vpow2.f32 %v902_v17  ;;  %937 = vadd.xlane.f32.xlu1 %v936_v18 }
 0x231   : > { %v804_v27 = vpop.f32.mrf.mxu3 }
 0x236   : > { %v3072_v29 = vpop.eup %2469 }
 0x237   : > { %v939_v9 = vsel %vm827_vm2, %v3072_v29, 0.0 }
 0x238   : > { %940 = vadd.xlane.f32.xlu2 %v939_v9 }
 0x239   : > { %v806_v32 = vpop.f32.mrf.mxu3  ;;  %v836_v39 = vpop.xlane.xlu0 %835 }
 0x23a   : > { %v807_v44 = vadd.f32 %v806_v32, %v2889_v4  ;;  %v884_v47 = vsub.f32 %v2909_v15, %v836_v39  ;;  %v805_v39 = vadd.f32 %v804_v27, %v2874_v59 }
 0x23c   : > { %v904_v49 = vmul.f32 1.442695, %v884_v47  ;;  %v3084_v52 = vadd.f32 %v807_v44, %v3079_v43 }
 0x23e   : > { %2471 = vpow2.f32 %v904_v49  ;;  %v879_v54 = vsel %vm827_vm2, %v3084_v52, -inf }
 0x23f   : > { %880 = vmax.xlane.f32.xlu1 %v879_v54 }
 0x241   : > { %v839_v15 = vpop.xlane.xlu1 %838 }
 0x242   : > { %1332 = vrot.lane.b32.xlu0 %v2785_v42, %s2675_s30  ;;  %v885_v32 = vsub.f32 %v2920_v21, %v839_v15 }
 0x244   : > { %v3092_v62 = vpop.eup %2471  ;;  %v906_v49 = vmul.f32 1.442695, %v885_v32 }
 0x245   : > { %v942_v4 = vsel %vm827_vm2, %v3092_v62, 0.0 }
 0x246   : > { %943 = vadd.xlane.f32.xlu2 %v942_v4 }
 0x249   : > { %v842_v4 = vpop.xlane.xlu0 %841 }
 0x24a   : > { %v886_v21 = vsub.f32 %v2931_v28, %v842_v4 }
 0x251   : > { %v845_v0 = vpop.xlane.xlu1 %844 }
 0x252   : > { %v887_v8 = vsub.f32 %v2942_v34, %v845_v0  ;;  %v3109_v34 = vld [vmem:[%s3699_s6 + $0x80] sm:$0xff] }
 0x253   : > { %v3112_v0 = vadd.f32 %v805_v39, %v3109_v34 }
 0x254   : > { %v910_v17 = vmul.f32 1.442695, %v887_v8  ;;  %v908_v8 = vmul.f32 1.442695, %v886_v21 }
 0x255   : > { %v876_v59 = vsel %vm827_vm2, %v3112_v0, -inf }
 0x256   : > { %2473 = vpow2.f32 %v910_v17 }
 0x25c   : > { %v3097_v18 = vpop.eup %2473 }
 0x25d   : > { %v951_v9 = vsel %vm827_vm2, %v3097_v18, 0.0 }
 0x25e   : > { %1282 = vrot.lane.b32.xlu2 %v2773_v24, %s2674_s29  ;;  %952 = vadd.xlane.f32.xlu1 %v951_v9 }
 0x263   : > { %v848_v44 = vpop.xlane.xlu1 %847 }
 0x264   : > { %v888_v47 = vsub.f32 %v2953_v40, %v848_v44 }
 0x266   : > { %v912_v54 = vmul.f32 1.442695, %v888_v47 }
 0x268   : > { %2475 = vpow2.f32 %v912_v54 }
 0x269   : > { %2477 = vpow2.f32 %v906_v49 }
 0x26b   : > { %v851_v15 = vpop.xlane.xlu2 %850  ;;  %v863_v39 = vpop.xlane.xlu1 %862 }
 0x26c   : > { %v889_v40 = vsub.f32 %v2973_v51, %v851_v15  ;;  %877 = vmax.xlane.f32.xlu0 %v876_v59 }
 0x26e   : > { %v3118_v27 = vpop.eup %2475  ;;  %v914_v17 = vmul.f32 1.442695, %v889_v40 }
 0x26f   : > { %v954_v9 = vsel %vm827_vm2, %v3118_v27, 0.0  ;;  %v3122_v32 = vpop.eup %2477 }
 0x270   : > { %2479 = vpow2.f32 %v914_v17  ;;  %955 = vadd.xlane.f32.xlu1 %v954_v9  ;;  %v945_v51 = vsel %vm827_vm2, %v3122_v32, 0.0 }
 0x271   : > { %v857_v28 = vpop.xlane.xlu0 %856  ;;  %2481 = vpow2.f32 %v908_v8 }
 0x272   : > { %v891_v44 = vsub.f32 %v2998_v3, %v857_v28  ;;  %v893_v3 = vsub.f32 %v2970_v50, %v863_v39 }
 0x273   : > { %v854_v47 = vpop.xlane.xlu2 %853  ;;  %v866_v17 = vpop.xlane.xlu1 %865 }
 0x274   : > { %v918_v49 = vmul.f32 1.442695, %v891_v44  ;;  %v890_v54 = vsub.f32 %v3001_v5, %v854_v47  ;;  %946 = vadd.xlane.f32.xlu0 %v945_v51  ;;  %v922_v44 = vmul.f32 1.442695, %v893_v3  ;;  %v894_v47 = vsub.f32 %v3007_v11, %v866_v17 }
 0x276   : > { %v3128_v4 = vpop.eup %2479  ;;  %2483 = vpow2.f32 %v918_v49  ;;  %v916_v21 = vmul.f32 1.442695, %v890_v54 }
 0x277   : > { %v957_v15 = vsel %vm827_vm2, %v3128_v4, 0.0  ;;  %v3132_v59 = vpop.eup %2481 }
 0x278   : > { %958 = vadd.xlane.f32.xlu1 %v957_v15  ;;  %2485 = vpow2.f32 %v916_v21  ;;  %v948_v5 = vsel %vm827_vm2, %v3132_v59, 0.0 }
 0x279   : > { %v860_v40 = vpop.xlane.xlu0 %859 }
 0x27a   : > { %v892_v8 = vsub.f32 %v3019_v20, %v860_v40  ;;  %v924_v20 = vmul.f32 1.442695, %v894_v47 }
 0x27b   : > { %v869_v51 = vpop.xlane.xlu2 %868 }
 0x27c   : > { %v3138_v9 = vpop.eup %2483  ;;  %v920_v28 = vmul.f32 1.442695, %v892_v8  ;;  %949 = vadd.xlane.f32.xlu0 %v948_v5  ;;  %v895_v39 = vsub.f32 %v3030_v30, %v869_v51 }
 0x27d   : > { %v963_v49 = vsel %vm827_vm2, %v3138_v9, 0.0 }
 0x27e   : > { %2487 = vpow2.f32 %v920_v28  ;;  %v3143_v50 = vpop.eup %2485  ;;  %v926_v11 = vmul.f32 1.442695, %v895_v39 }
 0x27f   : > { %2489 = vpow2.f32 %v922_v44  ;;  %v960_v54 = vsel %vm827_vm2, %v3143_v50, 0.0 }
 0x280   : > { %964 = vadd.xlane.f32.xlu1 %v963_v49  ;;  %2491 = vpow2.f32 %v924_v20 }
 0x281   : > { %2493 = vpow2.f32 %v926_v11 }
 0x284   : > { %v3148_v21 = vpop.eup %2487  ;;  %961 = vadd.xlane.f32.xlu0 %v960_v54 }
 0x285   : > { %v966_v15 = vsel %vm827_vm2, %v3148_v21, 0.0  ;;  %v3152_v40 = vpop.eup %2489 }
 0x286   : > { %v969_v3 = vsel %vm827_vm2, %v3152_v40, 0.0  ;;  %v3156_v8 = vpop.eup %2491 }
 0x287   : > { %v972_v30 = vsel %vm827_vm2, %v3156_v8, 0.0  ;;  %v3160_v17 = vpop.eup %2493 }
 0x288   : > { %967 = vadd.xlane.f32.xlu1 %v966_v15  ;;  %v975_v5 = vsel %vm827_vm2, %v3160_v17, 0.0 }
 0x28c   : > { %970 = vadd.xlane.f32.xlu0 %v969_v3 }
 0x290   : > { %973 = vadd.xlane.f32.xlu1 %v972_v30 }
 0x294   : > { %976 = vadd.xlane.f32.xlu0 %v975_v5 }
 0x299   : > { %v872_v28 = vpop.xlane.xlu2 %871 }
 0x29a   : > { %v896_v44 = vsub.f32 %v3047_v46, %v872_v28 }
 0x29c   : > { %v928_v47 = vmul.f32 1.442695, %v896_v44 }
 0x29e   : > { %2495 = vpow2.f32 %v928_v47 }
 0x2a1   : > { %v875_v51 = vpop.xlane.xlu0 %874 }
 0x2a2   : > { %v897_v49 = vsub.f32 %v3061_v2, %v875_v51 }
 0x2a3   : > { %v938_v20 = vpop.xlane.xlu1 %937 }
 0x2a4   : > { %v3166_v39 = vpop.eup %2495  ;;  %v930_v54 = vmul.f32 1.442695, %v897_v49  ;;  %2497 = vrcp.f32 %v938_v20 }
 0x2a5   : > { %v978_v11 = vsel %vm827_vm2, %v3166_v39, 0.0 }
 0x2a6   : > { %2499 = vpow2.f32 %v930_v54  ;;  %979 = vadd.xlane.f32.xlu1 %v978_v11 }
 0x2a8   : > { %1380 = vrot.lane.b32.xlu0 %v2791_v53, %s2675_s30 }
 0x2aa   : > { %v2498_v15 = vpop.eup %2497 }
 0x2ab   : > { %v941_v46 = vpop.xlane.xlu2 %940  ;;  %v1008_v30 = vmul.f32 %v2498_v15, %v3066_v10 }
 0x2ac   : > { %v3172_v3 = vpop.eup %2499  ;;  %2501 = vrcp.f32 %v941_v46 }
 0x2ad   : > { %v981_v2 = vsel %vm827_vm2, %v3172_v3, 0.0  ;;  %v1026_v28 = vpack.c.bf16 %v1008_v30, %v1008_v30 }
 0x2ae   : > { %982 = vadd.xlane.f32.xlu2 %v981_v2 }
 0x2af   : > { %v1046_v51 = vunpack.c.l.b16 %v1026_v28 }
 0x2b0   : > { %1404 = vrot.lane.b32.xlu0 %v2799_v1, %s2675_s30 }
 0x2b2   : > { %v2502_v5 = vpop.eup %2501 }
 0x2b3   : > { %v1009_v44 = vmul.f32 %v2502_v5, %v3072_v29 }
 0x2b4   : > { %v3196_v10 = vpop.permute.xlu0 %1332 }
 0x2b5   : > { %v1027_v47 = vpack.c.bf16 %v1009_v44, %v1009_v44 }
 0x2b7   : > { %v1047_v49 = vunpack.c.l.b16 %v1027_v47 }
 0x2b8   : > { %1354 = vrot.lane.b32.xlu0 %v2804_v7, %s2674_s29 }
 0x2b9   : > { %v1048_v20 = vpack.c.b16 %v1047_v49, %v1046_v51  ;;  %v944_v54 = vpop.xlane.xlu2 %943 }
 0x2ba   : > { %2503 = vrcp.f32 %v944_v54 }
 0x2bb   : > { %2362 = vmatmul.msk.bf16.vlgmr.msrb.gmra.mxu1 %vm827_vm2, %v1048_v20 }
 0x2bc   : > { %1212 = vmatpush.bf16.msrb.mxu1 %v3038_v16  ;;  %v881_v16 = vpop.xlane.xlu1 %880 }
 0x2bd   : > { %v899_v46 = vsub.f32 %v3084_v52, %v881_v16 }
 0x2bf   : > { %1330 = vrot.lane.b32.xlu1 %v2785_v42, %s2674_s29 }
 0x2c0   : > { %1452 = vrot.lane.b32.xlu0 %v2817_v25, %s2675_s30  ;;  %v2504_v5 = vpop.eup %2503 }
 0x2c1   : > { %v1010_v47 = vmul.f32 %v2504_v5, %v3092_v62 }
 0x2c3   : > { %v1028_v49 = vpack.c.bf16 %v1010_v47, %v1010_v47 }
 0x2c7   : > { %1356 = vrot.lane.b32.xlu1 %v2804_v7, %s2675_s30 }
 0x2c8   : > { %1474 = vrot.lane.b32.xlu0 %v2832_v37, %s2674_s29 }
 0x2cf   : > { %1428 = vrot.lane.b32.xlu1 %v2809_v14, %s2675_s30 }
 0x2d0   : > { %1737 = vrot.lane.b32.xlu0 %v2773_v24, %s2676_s10  ;;  %v934_v24 = vmul.f32 1.442695, %v899_v46  ;;  %v1071_v46 = vunpack.c.l.b16 %v1028_v49 }
 0x2d1   : > { %v953_v29 = vpop.xlane.xlu1 %952 }
 0x2d7   : > { %1450 = vrot.lane.b32.xlu1 %v2817_v25, %s2674_s29 }
 0x2df   : > { %v878_v11 = vpop.xlane.xlu0 %877  ;;  %1762 = vrot.lane.b32.xlu1 %v2779_v33, %s2676_s10 }
 0x2e0   : > { %v898_v15 = vsub.f32 %v3112_v0, %v878_v11 }
 0x2e2   : > { %v932_v2 = vmul.f32 1.442695, %v898_v15 }
 0x2e3   : > { %v956_v30 = vpop.xlane.xlu1 %955 }
 0x2e4   : > { %2505 = vpow2.f32 %v932_v2 }
 0x2e5   : > { %2507 = vrcp.f32 %v956_v30 }
 0x2e7   : > { %v947_v28 = vpop.xlane.xlu0 %946 }
 0x2e8   : > { %2509 = vrcp.f32 %v947_v28 }
 0x2e9   : > { %2511 = vpow2.f32 %v934_v24 }
 0x2ea   : > { %v3204_v44 = vpop.eup %2505  ;;  %2513 = vrcp.f32 %v953_v29 }
 0x2eb   : > { %v959_v33 = vpop.xlane.xlu1 %958  ;;  %v984_v0 = vsel %vm827_vm2, %v3204_v44, 0.0  ;;  %v2508_v52 = vpop.eup %2507 }
 0x2ec   : > { %2515 = vrcp.f32 %v959_v33  ;;  %985 = vadd.xlane.f32.xlu2 %v984_v0  ;;  %v1014_v16 = vmul.f32 %v2508_v52, %v3118_v27 }
 0x2ee   : > { %v2510_v51 = vpop.eup %2509  ;;  %v1032_v24 = vpack.c.bf16 %v1014_v16, %v1014_v16 }
 0x2ef   : > { %v3209_v20 = vpop.eup %2511  ;;  %v1011_v54 = vmul.f32 %v2510_v51, %v3122_v32  ;;  %v950_v11 = vpop.xlane.xlu0 %949 }
 0x2f0   : > { %v2514_v15 = vpop.eup %2513  ;;  %2517 = vrcp.f32 %v950_v11  ;;  %v987_v2 = vsel %vm827_vm2, %v3209_v20, 0.0  ;;  %v1121_v52 = vunpack.c.l.b16 %v1032_v24  ;;  %v1290_v11 = vsel %vm572_vm1, %v3057_v56, 0 }
 0x2f1   : > { %v1029_v62 = vpack.c.bf16 %v1011_v54, %v1011_v54  ;;  %v1013_v30 = vmul.f32 %v2514_v15, %v3097_v18 }
 0x2f2   : > { %v2516_v29 = vpop.eup %2515 }
 0x2f3   : > { %v1072_v5 = vunpack.c.l.b16 %v1029_v62  ;;  %v1015_v28 = vmul.f32 %v2516_v29, %v3128_v4  ;;  %v965_v47 = vpop.xlane.xlu1 %964  ;;  %v1031_v0 = vpack.c.bf16 %v1013_v30, %v1013_v30 }
 0x2f4   : > { %2519 = vrcp.f32 %v965_v47  ;;  %988 = vadd.xlane.f32.xlu2 %v987_v2 }
 0x2f5   : > { %v1073_v27 = vpack.c.b16 %v1072_v5, %v1071_v46  ;;  %v1033_v32 = vpack.c.bf16 %v1015_v28, %v1015_v28  ;;  %v1097_v15 = vunpack.c.l.b16 %v1031_v0  ;;  %v1314_v0 = vsel %vm572_vm1, %v3088_v60, 0 }
 0x2f6   : > { %v2518_v33 = vpop.eup %2517  ;;  %v1338_v60 = vsel %vm572_vm1, %v3196_v10, 0 }
 0x2f7   : > { %v1122_v51 = vunpack.c.l.b16 %v1033_v32  ;;  %v1012_v49 = vmul.f32 %v2518_v33, %v3132_v59  ;;  %2363 = vmatmul.msk.bf16.vlgmr.msrb.gmra.mxu2 %vm827_vm2, %v1073_v27  ;;  %v962_v54 = vpop.xlane.xlu0 %961 }
 0x2f8   : > { %1237 = vmatpush.bf16.msrb.mxu2 %v3034_v35  ;;  %2521 = vrcp.f32 %v962_v54 }
 0x2f9   : > { %v1123_v18 = vpack.c.b16 %v1122_v51, %v1121_v52  ;;  %v1030_v16 = vpack.c.bf16 %v1012_v49, %v1012_v49 }
 0x2fa   : > { %v2520_v4 = vpop.eup %2519 }
 0x2fb   : > { %v1096_v62 = vunpack.c.l.b16 %v1030_v16  ;;  %v1017_v29 = vmul.f32 %v2520_v4, %v3138_v9  ;;  %2365 = vmatmul.msk.bf16.vlgmr.msra.gmra.mxu1 %vm827_vm2, %v1123_v18  ;;  %v968_v46 = vpop.xlane.xlu1 %967 }
 0x2fc   : > { %1299 = vmatpush.bf16.xpose.msra.mxu1 %v1290_v11  ;;  %2523 = vrcp.f32 %v968_v46  ;;  %v1283_v46 = vpop.permute.xlu2 %1282 }
 0x2fd   : > { %v1098_v59 = vpack.c.b16 %v1097_v15, %v1096_v62  ;;  %v1035_v30 = vpack.c.bf16 %v1017_v29, %v1017_v29 }
 0x2fe   : > { %v2522_v2 = vpop.eup %2521 }
 0x2ff   : > { %v1016_v35 = vmul.f32 %v2522_v2, %v3143_v50  ;;  %v971_v24 = vpop.xlane.xlu0 %970  ;;  %2364 = vmatmul.msk.bf16.vlgmr.msrb.gmra.mxu3 %vm827_vm2, %v1098_v59  ;;  %v1147_v28 = vunpack.c.l.b16 %v1035_v30 }
 0x300   : > { %2525 = vrcp.f32 %v971_v24  ;;  %1262 = vmatpush.bf16.msrb.mxu3 %v3070_v22 }
 0x301   : > { %v1034_v56 = vpack.c.bf16 %v1016_v35, %v1016_v35 }
 0x302   : > { %v2524_v5 = vpop.eup %2523 }
 0x303   : > { %v1146_v9 = vunpack.c.l.b16 %v1034_v56  ;;  %v1018_v47 = vmul.f32 %v2524_v5, %v3148_v21  ;;  %v974_v27 = vpop.xlane.xlu1 %973 }
 0x304   : > { %2527 = vrcp.f32 %v974_v27 }
 0x305   : > { %v1148_v32 = vpack.c.b16 %v1147_v28, %v1146_v9  ;;  %v1036_v50 = vpack.c.bf16 %v1018_v47, %v1018_v47 }
 0x306   : > { %v2526_v33 = vpop.eup %2525 }
 0x307   : > { %v1019_v52 = vmul.f32 %v2526_v33, %v3152_v40  ;;  %v977_v51 = vpop.xlane.xlu0 %976  ;;  %2366 = vmatmul.msk.bf16.vlgmr.msra.gmra.mxu2 %vm827_vm2, %v1148_v32  ;;  %v1171_v54 = vunpack.c.l.b16 %v1036_v50 }
 0x308   : > { %2529 = vrcp.f32 %v977_v51  ;;  %1323 = vmatpush.bf16.xpose.msra.mxu2 %v1314_v0 }
 0x309   : > { %v1037_v22 = vpack.c.bf16 %v1019_v52, %v1019_v52 }
 0x30a   : > { %v2528_v49 = vpop.eup %2527 }
 0x30b   : > { %v1172_v18 = vunpack.c.l.b16 %v1037_v22  ;;  %v1020_v21 = vmul.f32 %v2528_v49, %v3156_v8 }
 0x30c   : > { %1378 = vrot.lane.b32.xlu2 %v2791_v53, %s2674_s29 }
 0x30d   : > { %v1173_v16 = vpack.c.b16 %v1172_v18, %v1171_v54  ;;  %v1038_v40 = vpack.c.bf16 %v1020_v21, %v1020_v21 }
 0x30e   : > { %v2530_v4 = vpop.eup %2529 }
 0x30f   : > { %v1021_v11 = vmul.f32 %v2530_v4, %v3160_v17  ;;  %2367 = vmatmul.msk.bf16.vlgmr.msra.gmra.mxu3 %vm827_vm2, %v1173_v16  ;;  %v1196_v62 = vunpack.c.l.b16 %v1038_v40 }
 0x310   : > { %1347 = vmatpush.bf16.xpose.msra.mxu3 %v1338_v60 }
 0x311   : > { %v1039_v15 = vpack.c.bf16 %v1021_v11, %v1021_v11 }
 0x313   : > { %v1197_v29 = vunpack.c.l.b16 %v1039_v15 }
 0x314   : > { %1402 = vrot.lane.b32.xlu2 %v2799_v1, %s2674_s29 }
 0x315   : > { %v1198_v8 = vpack.c.b16 %v1197_v29, %v1196_v62 }
 0x317   : > { %2368 = vmatmul.msk.bf16.vlgmr.msrb.gmra.mxu1 %vm827_vm2, %v1198_v8 }
 0x319   : > { %v980_v59 = vpop.xlane.xlu1 %979 }
 0x31a   : > { %v1381_v2 = vpop.permute.xlu0 %1380  ;;  %2531 = vrcp.f32 %v980_v59 }
 0x31b   : > { %v1386_v33 = vsel %vm572_vm1, %v1381_v2, 0 }
 0x31c   : > { %1426 = vrot.lane.b32.xlu2 %v2809_v14, %s2674_s29 }
 0x320   : > { %v2532_v10 = vpop.eup %2531 }
 0x321   : > { %v983_v17 = vpop.xlane.xlu2 %982  ;;  %v1022_v35 = vmul.f32 %v2532_v10, %v3166_v39 }
 0x322   : > { %2533 = vrcp.f32 %v983_v17  ;;  %v1405_v30 = vpop.permute.xlu0 %1404 }
 0x323   : > { %v1040_v56 = vpack.c.bf16 %v1022_v35, %v1022_v35  ;;  %v1410_v17 = vsel %vm572_vm1, %v1405_v30, 0 }
 0x324   : > { %1476 = vrot.lane.b32.xlu2 %v2832_v37, %s2675_s30 }
 0x325   : > { %v1221_v47 = vunpack.c.l.b16 %v1040_v56 }
 0x327   : > { %2371 = vmatmul.msk.bf16.vlgmr.msra.gmra.mxu1 %vm572_vm1, %v1283_v46 }
 0x328   : > { %v2534_v24 = vpop.eup %2533 }
 0x329   : > { %v1023_v5 = vmul.f32 %v2534_v24, %v3172_v3 }
 0x32a   : > { %v1355_v28 = vpop.permute.xlu0 %1354 }
 0x32b   : > { %v1041_v9 = vpack.c.bf16 %v1023_v5, %v1023_v5 }
 0x32c   : > { %1837 = vrot.lane.b32.xlu2 %v2791_v53, %s2676_s10 }
 0x32d   : > { %v1222_v27 = vunpack.c.l.b16 %v1041_v9 }
 0x32f   : > { %v1223_v32 = vpack.c.b16 %v1222_v27, %v1221_v47 }
 0x331   : > { %2369 = vmatmul.msk.bf16.vlgmr.msrb.gmra.mxu2 %vm827_vm2, %v1223_v32  ;;  %v1331_v0 = vpop.permute.xlu1 %1330 }
 0x332   : > { %1395 = vmatpush.bf16.xpose.msrb.mxu2 %v1386_v33  ;;  %v1453_v39 = vpop.permute.xlu0 %1452 }
 0x333   : > { %v1458_v3 = vsel %vm572_vm1, %v1453_v39, 0 }
 0x338   : > { %v3259_v18 = vpop.f32.mrf.mxu1 }
 0x339   : > { %v1357_v50 = vpop.permute.xlu1 %1356 }
 0x33a   : > { %v1362_v52 = vsel %vm572_vm1, %v1357_v50, 0  ;;  %v1475_v51 = vpop.permute.xlu0 %1474  ;;  %v3295_v50 = vld [vmem:[#allocation2 + $0x10] sm:$0xff] }
 0x33b   : > { %1371 = vmatpush.bf16.xpose.msrb.mxu1 %v1362_v52 }
 0x340   : > { %v3263_v62 = vpop.f32.mrf.mxu1 }
 0x341   : > { %2372 = vmatmul.msk.bf16.vlgmr.msra.gmra.mxu2 %vm572_vm1, %v3036_v36  ;;  %v1429_v53 = vpop.permute.xlu1 %1428 }
 0x342   : > { %1467 = vmatpush.bf16.xpose.msra.mxu2 %v1458_v3  ;;  %v1434_v22 = vsel %vm572_vm1, %v1429_v53, 0  ;;  %v1738_v49 = vpop.permute.xlu0 %1737  ;;  %2374 = vmatmul.msk.bf16.vlgmr.msrb.gmra.mxu1 %vm572_vm1, %v1355_v28 }
 0x343   : > { %1443 = vmatpush.bf16.xpose.msra.mxu1 %v1434_v22 }
 0x349   : > { %v1451_v21 = vpop.permute.xlu1 %1450 }
 0x34b   : > { %1750 = vmatpush.bf16.msrb.mxu1 %v1738_v49  ;;  %v3304_v49 = vld [vmem:[#allocation2 + $0x18] sm:$0xff] }
 0x351   : > { %v1763_v29 = vpop.permute.xlu1 %1762 }
 0x35f   : > { %v986_v54 = vpop.xlane.xlu2 %985 }
 0x360   : > { %2535 = vrcp.f32 %v986_v54 }
 0x366   : > { %v2536_v4 = vpop.eup %2535 }
 0x367   : > { %v989_v16 = vpop.xlane.xlu2 %988  ;;  %v1024_v60 = vmul.f32 %v2536_v4, %v3204_v44 }
 0x368   : > { %2537 = vrcp.f32 %v989_v16 }
 0x369   : > { %v1042_v40 = vpack.c.bf16 %v1024_v60, %v1024_v60 }
 0x36b   : > { %v1246_v46 = vunpack.c.l.b16 %v1042_v40 }
 0x36e   : > { %v2538_v36 = vpop.eup %2537 }
 0x36f   : > { %v1025_v11 = vmul.f32 %v2538_v36, %v3209_v20  ;;  %v1379_v15 = vpop.permute.xlu2 %1378 }
 0x370   : > { %2375 = vmatmul.msk.bf16.vlgmr.msrb.gmra.mxu2 %vm572_vm1, %v1379_v15 }
 0x371   : > { %v1043_v8 = vpack.c.bf16 %v1025_v11, %v1025_v11  ;;  %1775 = vmatpush.bf16.msrb.mxu2 %v1763_v29 }
 0x373   : > { %v1247_v59 = vunpack.c.l.b16 %v1043_v8 }
 0x375   : > { %v1248_v2 = vpack.c.b16 %v1247_v59, %v1246_v46 }
 0x377   : > { %v1403_v10 = vpop.permute.xlu2 %1402  ;;  %2370 = vmatmul.msk.bf16.vlgmr.msrb.gmra.mxu3 %vm827_vm2, %v1248_v2 }
 0x378   : > { %1419 = vmatpush.bf16.xpose.msrb.mxu3 %v1410_v17  ;;  %v3268_v44 = vpop.f32.mrf.mxu1 }
 0x37a   : > { %v3270_v20 = vpop.f32.mrf.mxu2 }
 0x37f   : > { %v1427_v35 = vpop.permute.xlu2 %1426 }
 0x380   : > { %v3272_v24 = vpop.f32.mrf.mxu1  ;;  %2377 = vmatmul.msk.bf16.vlgmr.msra.gmra.mxu1 %vm572_vm1, %v1427_v35  ;;  %2378 = vmatmul.msk.bf16.vlgmr.msra.gmra.mxu2 %vm572_vm1, %v1451_v21 }
 0x381   : > { %v1272_v56 = vpack.c.bf16 %v3272_v24, %v3268_v44 }
 0x382   : > { %v3278_v5 = vpop.f32.mrf.mxu2 }
 0x387   : > { %v1477_v30 = vpop.permute.xlu2 %1476  ;;  %2373 = vmatmul.msk.bf16.vlgmr.msra.gmra.mxu3 %vm572_vm1, %v1331_v0 }
 0x388   : > { %v1482_v28 = vsel %vm572_vm1, %v1477_v30, 0 }
 0x389   : > { %1491 = vmatpush.bf16.xpose.msra.mxu3 %v1482_v28  ;;  %v3342_v28 = vpop.f32.mrf.mxu3 }
 0x38a   : > { %v3282_v9 = vpop.f32.mrf.mxu2 }
 0x38f   : > { %v1838_v47 = vpop.permute.xlu2 %1837 }
 0x390   : > { %1850 = vmatpush.bf16.msra.mxu1 %v1838_v47 }
 0x391   : > { %v3344_v47 = vpop.f32.mrf.mxu3 }
 0x392   : > { %v3284_v27 = vpop.f32.mrf.mxu2 }
 0x393   : > { %v1273_v32 = vpack.c.bf16 %v3284_v27, %v3282_v9  ;;  %v1270_v27 = vpack.c.bf16 %v3278_v5, %v3270_v20 }
 0x394   : > { %v3288_v33 = vpop.f32.mrf.mxu1 }
 0x397   : > { %2376 = vmatmul.msk.bf16.vlgmr.msrb.gmra.mxu3 %vm572_vm1, %v1403_v10 }
 0x39c   : > { %v3291_v39 = vpop.f32.mrf.mxu1 }
 0x39d   : > { %v1275_v0 = vpack.c.bf16 %v3291_v39, %v3288_v33 }
 0x3a4   : > { %v1301_v52 = vpop.f32.mrf.mxu1 }
 0x3a5   : > { %v1302_v3 = vadd.f32 %v1301_v52, %v3295_v50 }
 0x3a7   : > { %2379 = vmatmul.msk.bf16.vlgmr.msra.gmra.mxu3 %vm572_vm1, %v1475_v51  ;;  %v3300_v53 = vadd.f32 %v1302_v3, %v2879_v61 }
 0x3a9   : > { %v1516_v22 = vsel %vm827_vm2, %v3300_v53, -inf }
 0x3aa   : > { %1517 = vmax.xlane.f32.xlu1 %v1516_v22 }
 0x3ac   : > { %v1303_v54 = vpop.f32.mrf.mxu1 }
 0x3ad   : > { %v1304_v21 = vadd.f32 %v1303_v54, %v3304_v49 }
 0x3af   : > { %v3308_v16 = vadd.f32 %v1304_v21, %v2894_v6 }
 0x3b1   : > { %v1519_v4 = vsel %vm827_vm2, %v3308_v16, -inf }
 0x3b2   : > { %1520 = vmax.xlane.f32.xlu2 %v1519_v4 }
 0x3b4   : > { %v3312_v51 = vpop.f32.mrf.mxu2 }
 0x3bc   : > { %v3314_v61 = vpop.f32.mrf.mxu2 }
 0x3bd   : > { %v1276_v60 = vpack.c.bf16 %v3314_v61, %v3312_v51 }
 0x3bf   : > { %v1373_v36 = vpop.f32.mrf.mxu1 }
 0x3c0   : > { %v1374_v40 = vadd.f32 %v1373_v36, %v3295_v50 }
 0x3c2   : > { %v3320_v11 = vadd.f32 %v1374_v40, %v2949_v38 }
 0x3c4   : > { %v1325_v15 = vpop.f32.mrf.mxu2  ;;  %v1534_v6 = vsel %vm827_vm2, %v3320_v11, -inf }
 0x3c5   : > { %v1326_v29 = vadd.f32 %v1325_v15, %v3295_v50  ;;  %1535 = vmax.xlane.f32.xlu1 %v1534_v6 }
 0x3c7   : > { %v1375_v8 = vpop.f32.mrf.mxu1  ;;  %v3326_v46 = vadd.f32 %v1326_v29, %v2905_v12 }
 0x3c8   : > { %v1376_v59 = vadd.f32 %v1375_v8, %v3304_v49 }
 0x3c9   : > { %v1522_v2 = vsel %vm827_vm2, %v3326_v46, -inf }
 0x3ca   : > { %1523 = vmax.xlane.f32.xlu0 %v1522_v2  ;;  %v3332_v38 = vadd.f32 %v1376_v59, %v2966_v48  ;;  %v3346_v48 = vpop.f32.mrf.mxu3 }
 0x3cc   : > { %v1327_v17 = vpop.f32.mrf.mxu2  ;;  %v1537_v10 = vsel %vm827_vm2, %v3332_v38, -inf }
 0x3cd   : > { %v1328_v35 = vadd.f32 %v1327_v17, %v3304_v49  ;;  %1538 = vmax.xlane.f32.xlu2 %v1537_v10 }
 0x3cf   : > { %v3338_v30 = vadd.f32 %v1328_v35, %v2916_v19 }
 0x3d1   : > { %v1525_v12 = vsel %vm827_vm2, %v3338_v30, -inf }
 0x3d2   : > { %1526 = vmax.xlane.f32.xlu1 %v1525_v12  ;;  %v3348_v52 = vpop.f32.mrf.mxu3 }
 0x3f3   : > { %v1397_v3 = vpop.f32.mrf.mxu2 }
 0x3f4   : > { %v1398_v36 = vadd.f32 %v1397_v3, %v3295_v50 }
 0x3f6   : > { %v3365_v59 = vadd.f32 %v1398_v36, %v2988_v58 }
 0x3f8   : > { %v1540_v12 = vsel %vm827_vm2, %v3365_v59, -inf }
 0x3fa   : > { %v3350_v22 = vpop.f32.mrf.mxu3 }
 0x3fb   : > { %v1399_v19 = vpop.f32.mrf.mxu2 }
 0x3fc   : > { %v1400_v2 = vadd.f32 %v1399_v19, %v3304_v49 }
 0x3fd   : > { %v1445_v54 = vpop.f32.mrf.mxu1 }
 0x3fe   : > { %v1446_v21 = vadd.f32 %v1445_v54, %v3295_v50 }
 0x400   : > { %v3354_v4 = vadd.f32 %v1446_v21, %v2994_v63 }
 0x402   : > { %v3357_v40 = vpop.f32.mrf.mxu3  ;;  %v1552_v15 = vsel %vm827_vm2, %v3354_v4, -inf }
 0x403   : > { %v1277_v6 = vpack.c.bf16 %v3357_v40, %v3350_v22  ;;  %1553 = vmax.xlane.f32.xlu2 %v1552_v15  ;;  %v1469_v17 = vpop.f32.mrf.mxu2  ;;  %v3621_v22 = vld [vmem:[%s3698_s5] ss:$0 sm:$0xff] }
 0x404   : > { %v1470_v54 = vadd.f32 %v1469_v17, %v3295_v50 }
 0x405   : > { %v1447_v29 = vpop.f32.mrf.mxu1 }
 0x406   : > { %v1448_v8 = vadd.f32 %v1447_v29, %v3304_v49  ;;  %v3389_v29 = vadd.f32 %v1470_v54, %v3043_v41 }
 0x408   : > { %v3368_v63 = vadd.f32 %v1448_v8, %v3024_v23  ;;  %v3380_v23 = vadd.f32 %v1400_v2, %v2983_v57  ;;  %v1558_v17 = vsel %vm827_vm2, %v3389_v29, -inf }
 0x40a   : > { %v1349_v10 = vpop.f32.mrf.mxu3  ;;  %v1555_v35 = vsel %vm827_vm2, %v3368_v63, -inf  ;;  %v1543_v36 = vsel %vm827_vm2, %v3380_v23, -inf }
 0x40b   : > { %v1350_v3 = vadd.f32 %v1349_v10, %v3295_v50  ;;  %1556 = vmax.xlane.f32.xlu0 %v1555_v35  ;;  %1541 = vmax.xlane.f32.xlu2 %v1540_v12 }
 0x40d   : > { %v3377_v58 = vadd.f32 %v1350_v3, %v2927_v26  ;;  %v1471_v26 = vpop.f32.mrf.mxu2 }
 0x40e   : > { %v1472_v8 = vadd.f32 %v1471_v26, %v3304_v49 }
 0x40f   : > { %v1528_v21 = vsel %vm827_vm2, %v3377_v58, -inf }
 0x410   : > { %1529 = vmax.xlane.f32.xlu1 %v1528_v21  ;;  %v3401_v41 = vadd.f32 %v1472_v8, %v3055_v55 }
 0x412   : > { %v1351_v19 = vpop.f32.mrf.mxu3  ;;  %v1561_v21 = vsel %vm827_vm2, %v3401_v41, -inf }
 0x413   : > { %v1352_v15 = vadd.f32 %v1351_v19, %v3304_v49  ;;  %1544 = vmax.xlane.f32.xlu0 %v1543_v36 }
 0x415   : > { %v3392_v57 = vadd.f32 %v1352_v15, %v2938_v31 }
 0x417   : > { %v1531_v2 = vsel %vm827_vm2, %v3392_v57, -inf }
 0x418   : > { %1532 = vmax.xlane.f32.xlu2 %v1531_v2  ;;  %1559 = vmax.xlane.f32.xlu1 %v1558_v17 }
 0x41a   : > { %v1421_v10 = vpop.f32.mrf.mxu3 }
 0x41b   : > { %v1422_v35 = vadd.f32 %v1421_v10, %v3295_v50 }
 0x41d   : > { %v1518_v12 = vpop.xlane.xlu1 %1517  ;;  %v3404_v31 = vadd.f32 %v1422_v35, %v3012_v13 }
 0x41e   : > { %v1570_v3 = vsub.f32 %v3300_v53, %v1518_v12 }
 0x41f   : > { %v1546_v54 = vsel %vm827_vm2, %v3404_v31, -inf }
 0x420   : > { %v1588_v19 = vmul.f32 1.442695, %v1570_v3  ;;  %1547 = vmax.xlane.f32.xlu0 %v1546_v54  ;;  %1562 = vmax.xlane.f32.xlu2 %v1561_v21 }
 0x422   : > { %2539 = vpow2.f32 %v1588_v19  ;;  %v1423_v36 = vpop.f32.mrf.mxu3 }
 0x423   : > { %v1424_v55 = vadd.f32 %v1423_v36, %v3304_v49 }
 0x425   : > { %v1521_v15 = vpop.xlane.xlu2 %1520  ;;  %v3413_v26 = vadd.f32 %v1424_v55, %v2960_v45 }
 0x426   : > { %v1571_v13 = vsub.f32 %v3308_v16, %v1521_v15 }
 0x427   : > { %v1549_v53 = vsel %vm827_vm2, %v3413_v26, -inf }
 0x428   : > { %v3418_v8 = vpop.eup %2539  ;;  %1550 = vmax.xlane.f32.xlu1 %v1549_v53  ;;  %v1590_v17 = vmul.f32 1.442695, %v1571_v13 }
 0x429   : > { %v1624_v2 = vsel %vm827_vm2, %v3418_v8, 0.0 }
 0x42a   : > { %v1493_v10 = vpop.f32.mrf.mxu3  ;;  %1625 = vadd.xlane.f32.xlu0 %v1624_v2  ;;  %2541 = vpow2.f32 %v1590_v17 }
 0x42b   : > { %v1494_v35 = vadd.f32 %v1493_v10, %v3295_v50 }
 0x42d   : > { %v3424_v12 = vadd.f32 %v1494_v35, %v3109_v34 }
 0x42f   : > { %v1564_v45 = vsel %vm827_vm2, %v3424_v12, -inf }
 0x430   : > { %1565 = vmax.xlane.f32.xlu1 %v1564_v45  ;;  %v3429_v54 = vpop.eup %2541 }
 0x431   : > { %v1627_v34 = vsel %vm827_vm2, %v3429_v54, 0.0 }
 0x432   : > { %v1495_v16 = vpop.f32.mrf.mxu3 }
 0x433   : > { %v1496_v3 = vadd.f32 %v1495_v16, %v3304_v49 }
 0x435   : > { %v3432_v21 = vadd.f32 %v1496_v3, %v3079_v43 }
 0x437   : > { %v1567_v19 = vsel %vm827_vm2, %v3432_v21, -inf }
 0x438   : > { %1568 = vmax.xlane.f32.xlu2 %v1567_v19  ;;  %1628 = vadd.xlane.f32.xlu1 %v1627_v34  ;;  %v3438_v50 = vpop.xlane.xlu1 %1535 }
 0x43d   : > { %v1524_v36 = vpop.xlane.xlu0 %1523 }
 0x43e   : > { %v1572_v55 = vsub.f32 %v3326_v46, %v1524_v36 }
 0x440   : > { %v1592_v15 = vmul.f32 1.442695, %v1572_v55  ;;  %v1539_v46 = vpop.xlane.xlu2 %1538 }
 0x442   : > { %2543 = vpow2.f32 %v1592_v15 }
 0x445   : > { %v1527_v49 = vpop.xlane.xlu1 %1526 }
 0x446   : > { %v1573_v13 = vsub.f32 %v3338_v30, %v1527_v49 }
 0x448   : > { %v3442_v43 = vpop.eup %2543  ;;  %v1594_v53 = vmul.f32 1.442695, %v1573_v13 }
 0x449   : > { %v1630_v2 = vsel %vm827_vm2, %v3442_v43, 0.0 }
 0x44a   : > { %2545 = vpow2.f32 %v1594_v53  ;;  %1631 = vadd.xlane.f32.xlu2 %v1630_v2  ;;  %v1577_v2 = vsub.f32 %v3332_v38, %v1539_v46 }
 0x450   : > { %v3446_v17 = vpop.eup %2545 }
 0x451   : > { %v1633_v10 = vsel %vm827_vm2, %v3446_v17, 0.0 }
 0x452   : > { %1634 = vadd.xlane.f32.xlu0 %v1633_v10 }
 0x476   : > { %v1554_v35 = vpop.xlane.xlu2 %1553 }
 0x477   : > { %v1582_v19 = vsub.f32 %v3354_v4, %v1554_v35 }
 0x479   : > { %v1612_v55 = vmul.f32 1.442695, %v1582_v19 }
 0x47e   : > { %v3450_v45 = vpop.xlane.xlu0 %1556  ;;  %v1542_v16 = vpop.xlane.xlu2 %1541 }
 0x47f   : > { %v1578_v30 = vsub.f32 %v3365_v59, %v1542_v16  ;;  %v1602_v16 = vmul.f32 1.442695, %v1577_v2 }
 0x481   : > { %v1604_v3 = vmul.f32 1.442695, %v1578_v30 }
 0x483   : > { %v1530_v34 = vpop.xlane.xlu1 %1529  ;;  %2547 = vpow2.f32 %v1604_v3 }
 0x484   : > { %v1574_v36 = vsub.f32 %v3377_v58, %v1530_v34 }
 0x486   : > { %v1596_v15 = vmul.f32 1.442695, %v1574_v36  ;;  %v1545_v49 = vpop.xlane.xlu0 %1544 }
 0x487   : > { %v1579_v13 = vsub.f32 %v3380_v23, %v1545_v49 }
 0x488   : > { %2549 = vpow2.f32 %v1596_v15 }
 0x489   : > { %v3456_v53 = vpop.eup %2547  ;;  %2551 = vpow2.f32 %v1612_v55  ;;  %v1606_v10 = vmul.f32 1.442695, %v1579_v13 }
 0x48a   : > { %v1648_v4 = vsel %vm827_vm2, %v3456_v53, 0.0 }
 0x48b   : > { %v1533_v59 = vpop.xlane.xlu2 %1532  ;;  %1649 = vadd.xlane.f32.xlu1 %v1648_v4  ;;  %2553 = vpow2.f32 %v1606_v10  ;;  %v3468_v38 = vpop.xlane.xlu1 %1559 }
 0x48c   : > { %v1575_v35 = vsub.f32 %v3392_v57, %v1533_v59 }
 0x48e   : > { %v3462_v58 = vpop.eup %2549  ;;  %v1598_v30 = vmul.f32 1.442695, %v1575_v35 }
 0x48f   : > { %v1636_v23 = vsel %vm827_vm2, %v3462_v58, 0.0  ;;  %v3466_v3 = vpop.eup %2551 }
 0x490   : > { %2555 = vpow2.f32 %v1598_v30  ;;  %1637 = vadd.xlane.f32.xlu2 %v1636_v23  ;;  %v1660_v57 = vsel %vm827_vm2, %v3466_v3, 0.0 }
 0x491   : > { %2557 = vpow2.f32 %v1602_v16  ;;  %v3472_v19 = vpop.eup %2553 }
 0x492   : > { %v1651_v49 = vsel %vm827_vm2, %v3472_v19, 0.0 }
 0x493   : > { %v1548_v46 = vpop.xlane.xlu0 %1547  ;;  %1661 = vadd.xlane.f32.xlu1 %v1660_v57 }
 0x494   : > { %v1580_v34 = vsub.f32 %v3404_v31, %v1548_v46 }
 0x496   : > { %v3475_v36 = vpop.eup %2555  ;;  %v1608_v55 = vmul.f32 1.442695, %v1580_v34  ;;  %v1563_v34 = vpop.xlane.xlu2 %1562 }
 0x497   : > { %v1639_v15 = vsel %vm827_vm2, %v3475_v36, 0.0  ;;  %v3481_v13 = vpop.eup %2557 }
 0x498   : > { %2559 = vpow2.f32 %v1608_v55  ;;  %1640 = vadd.xlane.f32.xlu0 %v1639_v15  ;;  %1652 = vadd.xlane.f32.xlu2 %v1651_v49  ;;  %v1645_v2 = vsel %vm827_vm2, %v3481_v13, 0.0 }
 0x49b   : > { %v1551_v10 = vpop.xlane.xlu1 %1550  ;;  %1646 = vadd.xlane.f32.xlu1 %v1645_v2 }
 0x49c   : > { %v1581_v31 = vsub.f32 %v3413_v26, %v1551_v10 }
 0x49d   : > { %v1626_v16 = vpop.xlane.xlu0 %1625 }
 0x49e   : > { %v3486_v59 = vpop.eup %2559  ;;  %v1610_v4 = vmul.f32 1.442695, %v1581_v31 }
 0x49f   : > { %v1654_v35 = vsel %vm827_vm2, %v3486_v59, 0.0 }
 0x4a0   : > { %2561 = vpow2.f32 %v1610_v4  ;;  %1655 = vadd.xlane.f32.xlu2 %v1654_v35 }
 0x4a1   : > { %2563 = vrcp.f32 %v1626_v16 }
 0x4a3   : > { %v3490_v30 = vpop.xlane.xlu1 %1565 }
 0x4a6   : > { %v3492_v23 = vpop.eup %2561 }
 0x4a7   : > { %v1657_v46 = vsel %vm827_vm2, %v3492_v23, 0.0  ;;  %v2564_v26 = vpop.eup %2563 }
 0x4a8   : > { %1658 = vadd.xlane.f32.xlu2 %v1657_v46  ;;  %v1696_v55 = vmul.f32 %v2564_v26, %v3418_v8  ;;  %v1576_v8 = vsub.f32 %v3320_v11, %v3438_v50 }
 0x4aa   : > { %v1714_v49 = vpack.c.bf16 %v1696_v55, %v1696_v55  ;;  %v1600_v46 = vmul.f32 1.442695, %v1576_v8 }
 0x4ab   : > { %v1629_v57 = vpop.xlane.xlu1 %1628  ;;  %v1569_v10 = vpop.xlane.xlu2 %1568 }
 0x4ac   : > { %2565 = vrcp.f32 %v1629_v57  ;;  %1787 = vrot.lane.b32.xlu0 %v2785_v42, %s2676_s10  ;;  %v1734_v4 = vunpack.c.l.b16 %v1714_v49 }
 0x4b2   : > { %v2566_v15 = vpop.eup %2565 }
 0x4b3   : > { %v1697_v2 = vmul.f32 %v2566_v15, %v3429_v54 }
 0x4b4   : > { %1887 = vrot.lane.b32.xlu1 %v2809_v14, %s2676_s10 }
 0x4b5   : > { %v1715_v31 = vpack.c.bf16 %v1697_v2, %v1697_v2 }
 0x4b7   : > { %v1735_v35 = vunpack.c.l.b16 %v1715_v31 }
 0x4b9   : > { %v1736_v16 = vpack.c.b16 %v1735_v35, %v1734_v4 }
 0x4bb   : > { %2380 = vmatmul.msk.bf16.vlgmr.msrb.gmra.mxu1 %vm827_vm2, %v1736_v16 }
 0x4bc   : > { %1812 = vrot.lane.b32.xlu1 %v2804_v7, %s2676_s10  ;;  %v1585_v7 = vsub.f32 %v3401_v41, %v1563_v34 }
 0x4bd   : > { %v1632_v42 = vpop.xlane.xlu2 %1631 }
 0x4be   : > { %2567 = vrcp.f32 %v1632_v42  ;;  %v1618_v11 = vmul.f32 1.442695, %v1585_v7 }
 0x4c0   : > { %1862 = vrot.lane.b32.xlu2 %v2799_v1, %s2676_s10 }
 0x4c4   : > { %1912 = vrot.lane.b32.xlu1 %v2817_v25, %s2676_s10  ;;  %v2568_v54 = vpop.eup %2567 }
 0x4c5   : > { %v1635_v14 = vpop.xlane.xlu0 %1634  ;;  %v1698_v57 = vmul.f32 %v2568_v54, %v3442_v43  ;;  %v1587_v43 = vsub.f32 %v3432_v21, %v1569_v10  ;;  %v1584_v21 = vsub.f32 %v3389_v29, %v3468_v38 }
 0x4c6   : > { %2569 = vrcp.f32 %v1635_v14 }
 0x4c7   : > { %2571 = vpow2.f32 %v1600_v46  ;;  %v1716_v55 = vpack.c.bf16 %v1698_v57, %v1698_v57  ;;  %v1616_v35 = vmul.f32 1.442695, %v1584_v21 }
 0x4c8   : > { %2573 = vpow2.f32 %v1618_v11 }
 0x4c9   : > { %v1759_v50 = vunpack.c.l.b16 %v1716_v55 }
 0x4cc   : > { %v2570_v26 = vpop.eup %2569  ;;  %1937 = vrot.lane.b32.xlu1 %v2832_v37, %s2676_s10  ;;  %v1622_v37 = vmul.f32 1.442695, %v1587_v43 }
 0x4cd   : > { %v1699_v15 = vmul.f32 %v2570_v26, %v3446_v17  ;;  %v3516_v49 = vpop.eup %2571  ;;  %v1583_v17 = vsub.f32 %v3368_v63, %v3450_v45  ;;  %v1586_v45 = vsub.f32 %v3424_v12, %v3490_v30  ;;  %v1966_v30 = vld [vmem:[%s3697_s4] sm:$0xf] }
 0x4ce   : > { %v1642_v41 = vsel %vm827_vm2, %v3516_v49, 0.0  ;;  %v3524_v34 = vpop.eup %2573  ;;  %2575 = vpow2.f32 %v1622_v37  ;;  %v1968_v57 = vunpack.c.l.b16 %v1966_v30 }
 0x4cf   : > { %v1717_v1 = vpack.c.bf16 %v1699_v15, %v1699_v15  ;;  %v1614_v31 = vmul.f32 1.442695, %v1583_v17  ;;  %v1669_v4 = vsel %vm827_vm2, %v3524_v34, 0.0  ;;  %v1620_v8 = vmul.f32 1.442695, %v1586_v45 }
 0x4d0   : > { %v1969_v15 = vpack.c.b16 %v1968_v57, %v1968_v57 }
 0x4d1   : > { %v1760_v25 = vunpack.c.l.b16 %v1717_v1  ;;  %2577 = vpow2.f32 %v1614_v31 }
 0x4d2   : > { %2579 = vpow2.f32 %v1616_v35 }
 0x4d3   : > { %v1761_v2 = vpack.c.b16 %v1760_v25, %v1759_v50  ;;  %2581 = vpow2.f32 %v1620_v8 }
 0x4d4   : > { %v3530_v10 = vpop.eup %2575 }
 0x4d5   : > { %2381 = vmatmul.msk.bf16.vlgmr.msrb.gmra.mxu2 %vm827_vm2, %v1761_v2  ;;  %v1675_v63 = vsel %vm827_vm2, %v3530_v10, 0.0 }
 0x4d6   : > { %1643 = vadd.xlane.f32.xlu0 %v1642_v41 }
 0x4d7   : > { %v3532_v16 = vpop.eup %2577 }
 0x4d8   : > { %v1663_v42 = vsel %vm827_vm2, %v3532_v16, 0.0  ;;  %v3540_v14 = vpop.eup %2579 }
 0x4d9   : > { %v1666_v29 = vsel %vm827_vm2, %v3540_v14, 0.0  ;;  %v3544_v38 = vpop.eup %2581 }
 0x4da   : > { %v1672_v54 = vsel %vm827_vm2, %v3544_v38, 0.0 }
 0x4de   : > { %1670 = vadd.xlane.f32.xlu0 %v1669_v4 }
 0x4e6   : > { %1676 = vadd.xlane.f32.xlu0 %v1675_v63 }
 0x4e9   : > { %1664 = vadd.xlane.f32.xlu2 %v1663_v42 }
 0x4f1   : > { %1667 = vadd.xlane.f32.xlu2 %v1666_v29 }
 0x4f9   : > { %1673 = vadd.xlane.f32.xlu2 %v1672_v54 }
 0x4fe   : > { %v1650_v12 = vpop.xlane.xlu1 %1649 }
 0x4ff   : > { %2583 = vrcp.f32 %v1650_v12 }
 0x503   : > { %v1638_v46 = vpop.xlane.xlu2 %1637 }
 0x504   : > { %2585 = vrcp.f32 %v1638_v46 }
 0x505   : > { %v2584_v55 = vpop.eup %2583 }
 0x506   : > { %v1704_v1 = vmul.f32 %v2584_v55, %v3456_v53  ;;  %v1662_v37 = vpop.xlane.xlu1 %1661 }
 0x508   : > { %v1722_v43 = vpack.c.bf16 %v1704_v1, %v1704_v1 }
 0x50a   : > { %v2586_v11 = vpop.eup %2585  ;;  %v1834_v21 = vunpack.c.l.b16 %v1722_v43 }
 0x50b   : > { %v1641_v26 = vpop.xlane.xlu0 %1640  ;;  %v1653_v7 = vpop.xlane.xlu2 %1652  ;;  %v1700_v31 = vmul.f32 %v2586_v11, %v3462_v58 }
 0x50c   : > { %2587 = vrcp.f32 %v1641_v26 }
 0x50d   : > { %2589 = vrcp.f32 %v1653_v7  ;;  %v1718_v53 = vpack.c.bf16 %v1700_v31, %v1700_v31 }
 0x50e   : > { %v1647_v46 = vpop.xlane.xlu1 %1646 }
 0x50f   : > { %v1784_v54 = vunpack.c.l.b16 %v1718_v53 }
 0x511   : > { %1970 = vrot.lane.b32.xlu2 %v1969_v15, %s2674_s29 }
 0x512   : > { %v2588_v50 = vpop.eup %2587 }
 0x513   : > { %v2590_v25 = vpop.eup %2589  ;;  %v1656_v2 = vpop.xlane.xlu2 %1655  ;;  %v1701_v41 = vmul.f32 %v2588_v50, %v3475_v36 }
 0x514   : > { %v1705_v17 = vmul.f32 %v2590_v25, %v3472_v19  ;;  %2591 = vrcp.f32 %v1656_v2 }
 0x515   : > { %v1719_v35 = vpack.c.bf16 %v1701_v41, %v1701_v41 }
 0x516   : > { %v1723_v4 = vpack.c.bf16 %v1705_v17, %v1705_v17 }
 0x517   : > { %v1785_v29 = vunpack.c.l.b16 %v1719_v35 }
 0x518   : > { %v1835_v63 = vunpack.c.l.b16 %v1723_v4 }
 0x519   : > { %v1786_v58 = vpack.c.b16 %v1785_v29, %v1784_v54 }
 0x51a   : > { %v1836_v45 = vpack.c.b16 %v1835_v63, %v1834_v21  ;;  %v2592_v8 = vpop.eup %2591  ;;  %v1278_v21 = vld [vmem:[%s3697_s4] sm:$0xf] }
 0x51b   : > { %v1659_v42 = vpop.xlane.xlu2 %1658  ;;  %v1706_v19 = vmul.f32 %v2592_v8, %v3486_v59  ;;  %v2084_v53 = vsel %vm572_vm1, %v1278_v21, 0 }
 0x51c   : > { %2593 = vrcp.f32 %v1659_v42  ;;  %2384 = vmatmul.msk.bf16.vlgmr.msra.gmra.mxu1 %vm827_vm2, %v1836_v45 }
 0x51d   : > { %v1724_v30 = vpack.c.bf16 %v1706_v19, %v1706_v19  ;;  %2595 = vrcp.f32 %v1647_v46 }
 0x51e   : > { %v1788_v36 = vpop.permute.xlu0 %1787 }
 0x51f   : > { %1800 = vmatpush.bf16.msrb.mxu3 %v1788_v36  ;;  %v1859_v55 = vunpack.c.l.b16 %v1724_v30 }
 0x522   : > { %v2594_v12 = vpop.eup %2593  ;;  %2382 = vmatmul.msk.bf16.vlgmr.msrb.gmra.mxu3 %vm827_vm2, %v1786_v58 }
 0x523   : > { %v1707_v57 = vmul.f32 %v2594_v12, %v3492_v23  ;;  %v1863_v26 = vpop.permute.xlu2 %1862  ;;  %v2596_v43 = vpop.eup %2595 }
 0x524   : > { %1875 = vmatpush.bf16.msra.mxu2 %v1863_v26  ;;  %v1703_v23 = vmul.f32 %v2596_v43, %v3481_v13 }
 0x525   : > { %v1725_v7 = vpack.c.bf16 %v1707_v57, %v1707_v57 }
 0x526   : > { %v1888_v1 = vpop.permute.xlu1 %1887  ;;  %v1721_v17 = vpack.c.bf16 %v1703_v23, %v1703_v23 }
 0x527   : > { %v1860_v15 = vunpack.c.l.b16 %v1725_v7  ;;  %1900 = vmatpush.bf16.msra.mxu3 %v1888_v1 }
 0x528   : > { %v1810_v35 = vunpack.c.l.b16 %v1721_v17 }
 0x529   : > { %v1861_v11 = vpack.c.b16 %v1860_v15, %v1859_v55 }
 0x52b   : > { %2385 = vmatmul.msk.bf16.vlgmr.msra.gmra.mxu2 %vm827_vm2, %v1861_v11  ;;  %2420 = vmatpush.bf16.xpose.msrb.mxu3 %v2084_v53 }
 0x52e   : > { %v1813_v50 = vpop.permute.xlu1 %1812 }
 0x52f   : > { %1825 = vmatpush.bf16.msrb.mxu0 %v1813_v50 }
 0x536   : > { %v1913_v59 = vpop.permute.xlu1 %1912 }
 0x537   : > { %1925 = vmatpush.bf16.msra.mxu0 %v1913_v59 }
 0x53e   : > { %v1938_v25 = vpop.permute.xlu1 %1937 }
 0x53f   : > { %1950 = vmatpush.bf16.msrb.mxu1 %v1938_v25 }
 0x543   : > { %2093 = vmatpush.bf16.xpose.msra.mxu1 %v2084_v53  ;;  %v1274_v53 = vpack.c.bf16 %v3348_v52, %v3346_v48  ;;  %v1271_v48 = vpack.c.bf16 %v3344_v47, %v3342_v28 }
 0x549   : > { %v1644_v2 = vpop.xlane.xlu0 %1643 }
 0x54a   : > { %2597 = vrcp.f32 %v1644_v2 }
 0x54b   : > { %2599 = vrcp.f32 %v1662_v37 }
 0x550   : > { %v2598_v41 = vpop.eup %2597 }
 0x551   : > { %v1702_v31 = vmul.f32 %v2598_v41, %v3516_v49  ;;  %v1671_v13 = vpop.xlane.xlu0 %1670  ;;  %v2600_v8 = vpop.eup %2599 }
 0x552   : > { %v1708_v49 = vmul.f32 %v2600_v8, %v3466_v3  ;;  %v1752_v41 = vpop.f32.mrf.mxu1 }
 0x553   : > { %v1720_v4 = vpack.c.bf16 %v1702_v31, %v1702_v31 }
 0x554   : > { %v1726_v54 = vpack.c.bf16 %v1708_v49, %v1708_v49 }
 0x555   : > { %v1809_v63 = vunpack.c.l.b16 %v1720_v4 }
 0x556   : > { %v1884_v37 = vunpack.c.l.b16 %v1726_v54 }
 0x557   : > { %v1811_v45 = vpack.c.b16 %v1810_v35, %v1809_v63  ;;  %v1269_v63 = vpack.c.bf16 %v3263_v62, %v3259_v18 }
 0x558   : > { %v1777_v35 = vpop.f32.mrf.mxu2 }
 0x559   : > { %2383 = vmatmul.msk.bf16.vlgmr.msrb.gmra.mxu0 %vm827_vm2, %v1811_v45  ;;  %v1677_v36 = vpop.xlane.xlu0 %1676 }
 0x55c   : > { %v1665_v42 = vpop.xlane.xlu2 %1664 }
 0x55d   : > { %2601 = vrcp.f32 %v1665_v42 }
 0x55e   : > { %2603 = vrcp.f32 %v1671_v13 }
 0x560   : > { %v1779_v45 = vpop.f32.mrf.mxu2 }
 0x561   : > { %v1958_v13 = vpack.c.bf16 %v1779_v45, %v1777_v35 }
 0x563   : > { %v2602_v29 = vpop.eup %2601 }
 0x564   : > { %v1709_v46 = vmul.f32 %v2602_v29, %v3532_v16  ;;  %v1668_v19 = vpop.xlane.xlu2 %1667  ;;  %v2604_v58 = vpop.eup %2603 }
 0x565   : > { %2605 = vrcp.f32 %v1668_v19  ;;  %v1711_v30 = vmul.f32 %v2604_v58, %v3524_v34 }
 0x566   : > { %v1727_v12 = vpack.c.bf16 %v1709_v46, %v1709_v46  ;;  %2607 = vrcp.f32 %v1677_v36 }
 0x567   : > { %v1729_v55 = vpack.c.bf16 %v1711_v30, %v1711_v30 }
 0x568   : > { %v1885_v57 = vunpack.c.l.b16 %v1727_v12 }
 0x569   : > { %v1910_v11 = vunpack.c.l.b16 %v1729_v55 }
 0x56a   : > { %v1886_v26 = vpack.c.b16 %v1885_v57, %v1884_v37 }
 0x56b   : > { %v2606_v7 = vpop.eup %2605 }
 0x56c   : > { %v1710_v15 = vmul.f32 %v2606_v7, %v3540_v14  ;;  %v1674_v3 = vpop.xlane.xlu2 %1673  ;;  %2386 = vmatmul.msk.bf16.vlgmr.msra.gmra.mxu3 %vm827_vm2, %v1886_v26  ;;  %v2608_v1 = vpop.eup %2607 }
 0x56d   : > { %2609 = vrcp.f32 %v1674_v3  ;;  %v1713_v50 = vmul.f32 %v2608_v1, %v3530_v10  ;;  %v1754_v10 = vpop.f32.mrf.mxu1 }
 0x56e   : > { %v1728_v16 = vpack.c.bf16 %v1710_v15, %v1710_v15 }
 0x56f   : > { %v1731_v43 = vpack.c.bf16 %v1713_v50, %v1713_v50 }
 0x570   : > { %v1909_v59 = vunpack.c.l.b16 %v1728_v16 }
 0x571   : > { %v1935_v31 = vunpack.c.l.b16 %v1731_v43 }
 0x572   : > { %v1911_v25 = vpack.c.b16 %v1910_v11, %v1909_v59 }
 0x573   : > { %v2610_v2 = vpop.eup %2609 }
 0x574   : > { %v1712_v34 = vmul.f32 %v2610_v2, %v3544_v38  ;;  %2387 = vmatmul.msk.bf16.vlgmr.msra.gmra.mxu0 %vm827_vm2, %v1911_v25  ;;  %v1971_v23 = vpop.permute.xlu2 %1970  ;;  %v1957_v38 = vpack.c.bf16 %v1754_v10, %v1752_v41 }
 0x575   : > { %v2000_v14 = vsel %vm572_vm1, %v1971_v23, 0 }
 0x576   : > { %v1730_v17 = vpack.c.bf16 %v1712_v34, %v1712_v34  ;;  %2009 = vmatpush.bf16.xpose.msrb.mxu0 %v2000_v14  ;;  %2419 = vmatpush.bf16.xpose.msrb.mxu2 %v2000_v14 }
 0x578   : > { %v1934_v4 = vunpack.c.l.b16 %v1730_v17 }
 0x57a   : > { %v1936_v21 = vpack.c.b16 %v1935_v31, %v1934_v4 }
 0x57c   : > { %2388 = vmatmul.msk.bf16.vlgmr.msrb.gmra.mxu1 %vm827_vm2, %v1936_v21  ;;  %2402 = vmatmul.msk.bf16.vlgmr.msrb.gmra.mxu3 %vm572_vm1, %v1273_v32 }
 0x584   : > { %2389 = vmatmul.msk.bf16.vlgmr.msrb.gmra.mxu0 %vm572_vm1, %v1957_v38 }
 0x58c   : > { %2398 = vmatmul.msk.bf16.vlgmr.msra.gmra.mxu1 %vm572_vm1, %v1269_v63  ;;  %2403 = vmatmul.msk.bf16.gmra.mxu3 %vm572_vm1, %v1274_v53 }
 0x594   : > { %2390 = vmatmul.msk.bf16.gmra.mxu0 %vm572_vm1, %v1958_v13 }
 0x599   : > { %v1852_v9 = vpop.f32.mrf.mxu1 }
 0x59c   : > { %2399 = vmatmul.msk.bf16.gmra.mxu1 %vm572_vm1, %v1270_v27  ;;  %2404 = vmatmul.msk.bf16.gmra.mxu3 %vm572_vm1, %v1275_v0 }
 0x5a1   : > { %v1854_v18 = vpop.f32.mrf.mxu1 }
 0x5a2   : > { %v1961_v62 = vpack.c.bf16 %v1854_v18, %v1852_v9 }
 0x5a4   : > { %2393 = vmatmul.msk.bf16.vlgmr.msrb.gmra.mxu2 %vm572_vm1, %v1961_v62 }
 0x5a5   : > { %v1802_v32 = vpop.f32.mrf.mxu3 }
 0x5ac   : > { %2400 = vmatmul.msk.bf16.gmra.mxu1 %vm572_vm1, %v1271_v48  ;;  %2405 = vmatmul.msk.bf16.gmra.mxu3 %vm572_vm1, %v1276_v60 }
 0x5ad   : > { %v1804_v20 = vpop.f32.mrf.mxu3 }
 0x5ae   : > { %v1959_v5 = vpack.c.bf16 %v1804_v20, %v1802_v32  ;;  %v1877_v33 = vpop.f32.mrf.mxu2 }
 0x5b0   : > { %2391 = vmatmul.msk.bf16.gmra.mxu0 %vm572_vm1, %v1959_v5 }
 0x5b6   : > { %v1879_v39 = vpop.f32.mrf.mxu2 }
 0x5b7   : > { %v1962_v0 = vpack.c.bf16 %v1879_v39, %v1877_v33 }
 0x5b9   : > { %2394 = vmatmul.msk.bf16.gmra.mxu2 %vm572_vm1, %v1962_v0 }
 0x5bc   : > { %2401 = vmatmul.msk.bf16.gmra.mxu1 %vm572_vm1, %v1272_v56  ;;  %2406 = vmatmul.msk.bf16.gmra.mxu3 %vm572_vm1, %v1277_v6 }
 0x5d6   : > { %v1827_v51 = vpop.f32.mrf.mxu0 }
 0x5de   : > { %v1829_v61 = vpop.f32.mrf.mxu0 }
 0x5df   : > { %v1960_v60 = vpack.c.bf16 %v1829_v61, %v1827_v51 }
 0x5e1   : > { %2392 = vmatmul.msk.bf16.gmra.mxu0 %vm572_vm1, %v1960_v60 }
 0x5ef   : > { %v1902_v28 = vpop.f32.mrf.mxu3 }
 0x5f1   : > { %v1927_v47 = vpop.f32.mrf.mxu0 }
 0x5f7   : > { %v1904_v52 = vpop.f32.mrf.mxu3 }
 0x5f8   : > { %v1963_v42 = vpack.c.bf16 %v1904_v52, %v1902_v28 }
 0x5f9   : > { %v1929_v8 = vpop.f32.mrf.mxu0  ;;  %v1952_v49 = vpop.f32.mrf.mxu1 }
 0x5fa   : > { %2395 = vmatmul.msk.bf16.gmra.mxu2 %vm572_vm1, %v1963_v42  ;;  %v1964_v56 = vpack.c.bf16 %v1929_v8, %v1927_v47 }
 0x5ff   : > { %v2115_v3 = vpop.f32.mrf.mxu3 }
 0x601   : > { %v1954_v44 = vpop.f32.mrf.mxu1  ;;  %v2011_v24 = vpop.f32.mrf.mxu0 }
 0x602   : > { %v1965_v12 = vpack.c.bf16 %v1954_v44, %v1952_v49 }
 0x607   : > { %v2117_v2 = vpop.f32.mrf.mxu3 }
 0x609   : > { %v2095_v40 = vpop.f32.mrf.mxu1  ;;  %v2013_v54 = vpop.f32.mrf.mxu0 }
 0x60a   : > { %v2096_v6 = vadd.f32 %v2095_v40, %v2011_v24  ;;  %2396 = vmatmul.msk.bf16.gmra.mxu2 %vm572_vm1, %v1964_v56 }
 0x60c   : > { %v2144_v29 = vadd.f32 %v3621_v22, %v2096_v6 }
 0x60e   : > { %2162 = vst.msk [vmem:[%s3627_s18] sm:$0xff] %vm439_vm0, %v2144_v29 }
 0x60f   : > { %v2120_v21 = vpop.f32.mrf.mxu3 }
 0x611   : > { %v2097_v36 = vpop.f32.mrf.mxu1  ;;  %v2016_v58 = vpop.f32.mrf.mxu0 }
 0x612   : > { %v2098_v46 = vadd.f32 %v2097_v36, %v2013_v54 }
 0x614   : > { %v2145_v19 = vadd.f32 %v3621_v22, %v2098_v46 }
 0x616   : > { %2163 = vst.msk [vmem:[%s3627_s18 + $0x8] sm:$0xff] %vm439_vm0, %v2145_v19 }
 0x617   : > { %v2122_v63 = vpop.f32.mrf.mxu3 }
 0x619   : > { %v2100_v37 = vpop.f32.mrf.mxu1  ;;  %v2018_v26 = vpop.f32.mrf.mxu0 }
 0x61a   : > { %v2101_v30 = vadd.f32 %v2100_v37, %v2016_v58  ;;  %2397 = vmatmul.msk.bf16.gmra.mxu2 %vm572_vm1, %v1965_v12 }
 0x61c   : > { %v2146_v57 = vadd.f32 %v3621_v22, %v2101_v30 }
 0x61e   : > { %2164 = vst.msk [vmem:[%s3627_s18 + $0x10] sm:$0xff] %vm439_vm0, %v2146_v57 }
 0x61f   : > { %v2125_v33 = vpop.f32.mrf.mxu3 }
 0x621   : > { %v2102_v7 = vpop.f32.mrf.mxu1 }
 0x622   : > { %v2103_v55 = vadd.f32 %v2102_v7, %v2018_v26 }
 0x624   : > { %v2147_v15 = vadd.f32 %v3621_v22, %v2103_v55 }
 0x626   : > { %2165 = vst.msk [vmem:[%s3627_s18 + $0x18] sm:$0xff] %vm439_vm0, %v2147_v15 }
 0x627   : > { %v2031_v1 = vpop.f32.mrf.mxu2  ;;  %v2127_v39 = vpop.f32.mrf.mxu3 }
 0x628   : > { %v2116_v16 = vadd.f32 %v2115_v3, %v2031_v1 }
 0x629   : > { %v2105_v50 = vpop.f32.mrf.mxu1 }
 0x62a   : > { %v2152_v11 = vadd.f32 %v3621_v22, %v2116_v16 }
 0x62c   : > { %2170 = vst.msk [vmem:[%s3627_s18 + $0x40] sm:$0xff] %vm439_vm0, %v2152_v11 }
 0x62d   : > { %v2021_v59 = vpop.f32.mrf.mxu0 }
 0x62e   : > { %v2106_v25 = vadd.f32 %v2105_v50, %v2021_v59 }
 0x62f   : > { %v2033_v43 = vpop.f32.mrf.mxu2  ;;  %v2130_v47 = vpop.f32.mrf.mxu3 }
 0x630   : > { %v2148_v34 = vadd.f32 %v3621_v22, %v2106_v25  ;;  %v2118_v23 = vadd.f32 %v2117_v2, %v2033_v43 }
 0x631   : > { %v2107_v14 = vpop.f32.mrf.mxu1 }
 0x632   : > { %2166 = vst.msk [vmem:[%s3627_s18 + $0x20] sm:$0xff] %vm439_vm0, %v2148_v34  ;;  %v2153_v41 = vadd.f32 %v3621_v22, %v2118_v23 }
 0x634   : > { %2171 = vst.msk [vmem:[%s3627_s18 + $0x48] sm:$0xff] %vm439_vm0, %v2153_v41 }
 0x635   : > { %v2023_v17 = vpop.f32.mrf.mxu0 }
 0x636   : > { %v2108_v31 = vadd.f32 %v2107_v14, %v2023_v17 }
 0x637   : > { %v2132_v44 = vpop.f32.mrf.mxu3 }
 0x638   : > { %v2149_v4 = vadd.f32 %v3621_v22, %v2108_v31 }
 0x639   : > { %v2110_v9 = vpop.f32.mrf.mxu1 }
 0x63a   : > { %2167 = vst.msk [vmem:[%s3627_s18 + $0x28] sm:$0xff] %vm439_vm0, %v2149_v4 }
 0x63c   : > { %v2036_v10 = vpop.f32.mrf.mxu2 }
 0x63d   : > { %v2121_v38 = vadd.f32 %v2120_v21, %v2036_v10 }
 0x63f   : > { %v2154_v35 = vadd.f32 %v3621_v22, %v2121_v38  ;;  %v2135_v6 = vpop.f32.mrf.mxu3 }
 0x641   : > { %2172 = vst.msk [vmem:[%s3627_s18 + $0x50] sm:$0xff] %vm439_vm0, %v2154_v35  ;;  %v2112_v32 = vpop.f32.mrf.mxu1 }
 0x644   : > { %v2038_v53 = vpop.f32.mrf.mxu2 }
 0x645   : > { %v2123_v45 = vadd.f32 %v2122_v63, %v2038_v53 }
 0x647   : > { %v2155_v13 = vadd.f32 %v3621_v22, %v2123_v45  ;;  %v2137_v46 = vpop.f32.mrf.mxu3 }
 0x649   : > { %2173 = vst.msk [vmem:[%s3627_s18 + $0x58] sm:$0xff] %vm439_vm0, %v2155_v13 }
 0x65e   : > { %v2026_v27 = vpop.f32.mrf.mxu0 }
 0x65f   : > { %v2111_v18 = vadd.f32 %v2110_v9, %v2026_v27 }
 0x661   : > { %v2150_v62 = vadd.f32 %v3621_v22, %v2111_v18 }
 0x663   : > { %2168 = vst.msk [vmem:[%s3627_s18 + $0x30] sm:$0xff] %vm439_vm0, %v2150_v62 }
 0x666   : > { %v2028_v48 = vpop.f32.mrf.mxu0 }
 0x667   : > { %v2113_v20 = vadd.f32 %v2112_v32, %v2028_v48 }
 0x669   : > { %v2151_v5 = vadd.f32 %v3621_v22, %v2113_v20 }
 0x66b   : > { %2169 = vst.msk [vmem:[%s3627_s18 + $0x38] sm:$0xff] %vm439_vm0, %v2151_v5 }
 0x67d   : > { %v2041_v0 = vpop.f32.mrf.mxu2 }
 0x67e   : > { %v2126_v51 = vadd.f32 %v2125_v33, %v2041_v0 }
 0x680   : > { %v2156_v61 = vadd.f32 %v3621_v22, %v2126_v51 }
 0x682   : > { %2174 = vst.msk [vmem:[%s3627_s18 + $0x60] sm:$0xff] %vm439_vm0, %v2156_v61 }
 0x685   : > { %v2043_v60 = vpop.f32.mrf.mxu2 }
 0x686   : > { %v2128_v28 = vadd.f32 %v2127_v39, %v2043_v60 }
 0x688   : > { %v2157_v52 = vadd.f32 %v3621_v22, %v2128_v28 }
 0x68a   : > { %2175 = vst.msk [vmem:[%s3627_s18 + $0x68] sm:$0xff] %vm439_vm0, %v2157_v52 }
 0x68d   : > { %v2046_v42 = vpop.f32.mrf.mxu2 }
 0x68e   : > { %v2131_v8 = vadd.f32 %v2130_v47, %v2046_v42 }
 0x690   : > { %v2158_v49 = vadd.f32 %v3621_v22, %v2131_v8 }
 0x692   : > { %2176 = vst.msk [vmem:[%s3627_s18 + $0x70] sm:$0xff] %vm439_vm0, %v2158_v49 }
 0x695   : > { %v2048_v24 = vpop.f32.mrf.mxu2 }
 0x696   : > { %v2133_v56 = vadd.f32 %v2132_v44, %v2048_v24 }
 0x698   : > { %v2159_v40 = vadd.f32 %v3621_v22, %v2133_v56 }
 0x69a   : > { %2177 = vst.msk [vmem:[%s3627_s18 + $0x78] sm:$0xff] %vm439_vm0, %v2159_v40 }
 0x69d   : > { %v2051_v29 = vpop.f32.mrf.mxu2 }
 0x69e   : > { %v2136_v54 = vadd.f32 %v2135_v6, %v2051_v29 }
 0x6a0   : > { %v2160_v36 = vadd.f32 %v3621_v22, %v2136_v54 }
 0x6a2   : > { %2178 = vst.msk [vmem:[%s3627_s18 + $0x80] sm:$0xff] %vm439_vm0, %v2160_v36 }
 0x6a5   : > { %v2053_v19 = vpop.f32.mrf.mxu2 }
 0x6a6   : > { %v2138_v58 = vadd.f32 %v2137_v46, %v2053_v19 }
 0x6a8   : > { %v2161_v12 = vadd.f32 %v3621_v22, %v2138_v58 }
 0x6aa   : > { %2179 = vst.msk [vmem:[%s3627_s18 + $0x88] sm:$0xff] %vm439_vm0, %v2161_v12 }
 0x6ab PF: > { %s18_s26 = sadd.s32 1, %s2667_s26   ;;  %s3701_s24 = smov %s2663_s25 }
 0x6ac   : > { %p15_p8 = scmp.ge.s32.totalorder %s18_s26, 4   ;;  %s3702_s25 = smov %s3704_s28 }
 0x6ae   :  { %17 = sbr.rel (!%p15_p8) target bundleno = 2 (0x2), region = 87 }
 0x6b3   :  { %2210 = vsyncpa [#allocation3], 1 }
 0x6b4   :  { %2212 = vsyncpa [#allocation3 + $0x1], 1 }

</bundles_post_ra>
